<compile_context>
chip_gen: v7x
topology: tpu7x:2x2x1
jax: 0.10.0
libtpu: 0.0.40
codegen_flags: <defaults>
</compile_context>

<pallas_src>
import math

import jax
import jax.numpy as jnp
from jax.experimental import pallas as pl
from jax.experimental.pallas import tpu as pltpu


def _make_kernel(h, d_k, compute_dtype):
    scale = 1.0 / math.sqrt(d_k)
    cdt = compute_dtype
    use_approx_recip = (cdt != jnp.float32)   # f32 path stays reference-accurate

    def kernel(q_ref, k_ref, v_ref,
               wq_ref, bq_ref, wk_ref, bk_ref, wvo_ref, bvo_ref, bo_ref,
               o_ref):
        bt, nq, d_model = q_ref.shape
        nk = k_ref.shape[1]
        rows_q = bt * nq
        rows_k = bt * nk

        # ---- fused full-width projections: one MXU matmul per Q / K / V -----
        # (inputs arrive in their original dtype; cast here, not in the wrapper)
        q2d = q_ref[...].reshape(rows_q, d_model).astype(cdt)
        k2d = k_ref[...].reshape(rows_k, d_model).astype(cdt)
        v2d = v_ref[...].reshape(rows_k, d_model).astype(cdt)

        qp = jnp.dot(q2d, wq_ref[...], preferred_element_type=jnp.float32) + bq_ref[...]
        kp = jnp.dot(k2d, wk_ref[...], preferred_element_type=jnp.float32) + bk_ref[...]
        # fc_o folded into fc_v: vo[r, hh] = (v @ Wv + bv)[r, hh*d_v:(hh+1)*d_v] . Wo_hh
        vo = jnp.dot(v2d, wvo_ref[...], preferred_element_type=jnp.float32) + bvo_ref[...]

        qp = qp.astype(cdt)                             # (rows_q, h*d_k)
        kp = kp.astype(cdt)                             # (rows_k, h*d_k)
        vo_b = vo.reshape(bt, nk, h).astype(cdt)        # (bt, nk, h)

        # out = sum_h softmax_h @ vo_h + bo, with the softmax normalization
        # applied AFTER the contraction (exact algebra; touches nq values/head).
        acc = jnp.zeros((bt, nq, 1), jnp.float32)
        # h is small; a static unroll keeps the per-head lane slices static.
        for hh in range(h):
            ks = hh * d_k
            qh = qp[:, ks:ks + d_k].reshape(bt, nq, d_k)
            kh = kp[:, ks:ks + d_k].reshape(bt, nk, d_k)

            # bt-batched scores; contraction on the last axes (no explicit kh.T).
            s = jnp.einsum('bqd,bkd->bqk', qh, kh,
                           preferred_element_type=jnp.float32) * scale
            p = jnp.exp(s - jnp.max(s, axis=-1, keepdims=True))      # un-normalized
            l = jnp.sum(p, axis=-1, keepdims=True)                    # (bt, nq, 1), f32

            # batched matvec of p against the wo-folded value column of head hh
            num = jnp.einsum('bqk,bkj->bqj', p.astype(cdt), vo_b[:, :, hh:hh + 1],
                             preferred_element_type=jnp.float32)      # (bt, nq, 1)
            if use_approx_recip:
                acc = acc + num * pl.reciprocal(l, approx=True)       # EUP slot (fast path)
            else:
                acc = acc + num / l                                   # exact f32 path

        out_bq = acc.reshape(bt, nq) + bo_ref[...]                    # (bt, nq)
        # Store transposed so the lane dim is bt (unmasked vst when bt % 128 == 0);
        # the wrapper undoes the transpose outside the kernel.
        o_ref[0] = jnp.transpose(out_bq).astype(o_ref.dtype)          # (nq, bt)

    return kernel


def _choose_batch_tile(b_s, nq, target_rows):
    bt = max(1, min(b_s, max(1, target_rows // max(nq, 1))))
    # Round up to a lane/MXU-friendly size: multiples of 128 once the tile is
    # large (lane-dense (nq, bt) stores + 128-aligned projection M), multiples of
    # 8 (sublane) otherwise.  No forced 2-way split: on 1-TC chips (v5e/v6e) it
    # only doubles per-step overhead; on v7x megacore sharding kicks in whenever
    # the batch naturally spans >= 2 grid steps.
    align = 128 if bt >= 128 else 8
    return -(-bt // align) * align


def score_dot_product_attention(queries, keys, values, params, *, h, d_k, d_v,
                                compute_dtype=jnp.float32, target_rows=2048):
    """Forward of ScoreDotProductAttention (mask / attention_weights = None).

    params: wq/wk/wv stored pre-transposed as (d_model, h*d_k|h*d_v), biases 1-D,
            wo as (h*d_v, 1), bo as (1,).
    """
    b_s, nq, d_model = queries.shape
    nk = keys.shape[1]
    out_dtype = queries.dtype
    cdt = compute_dtype

    bt = _choose_batch_tile(b_s, nq, target_rows)
    num_chunks = pl.cdiv(b_s, bt)
    b_pad = num_chunks * bt
    if b_pad != b_s:
        pad = ((0, b_pad - b_s), (0, 0), (0, 0))
        queries = jnp.pad(queries, pad)
        keys = jnp.pad(keys, pad)
        values = jnp.pad(values, pad)

    # ---- weight prep (tiny): fold fc_o into fc_v; only weights get cast ------
    wo = params["wo"].reshape(h, d_v)                                    # (h*d_v, 1) -> (h, d_v)
    wvo = jnp.einsum('dhv,hv->dh',
                     params["wv"].reshape(d_model, h, d_v), wo).astype(cdt)   # (d_model, h)
    bvo = jnp.sum(params["bv"].reshape(h, d_v) * wo, axis=-1).reshape(1, h).astype(jnp.float32)
    wq = params["wq"].astype(cdt)                                        # (d_model, h*d_k)
    wk = params["wk"].astype(cdt)
    bq = params["bq"].reshape(1, h * d_k).astype(jnp.float32)
    bk = params["bk"].reshape(1, h * d_k).astype(jnp.float32)
    bo = params["bo"].reshape(1, 1).astype(jnp.float32)

    kernel = _make_kernel(h, d_k, cdt)

    def full_spec(a):
        ndim = a.ndim
        # Whole-array block with a constant index map -> DMA'd once, never refetched.
        return pl.BlockSpec(a.shape, lambda i: (0,) * ndim)

    out = pl.pallas_call(
        kernel,
        out_shape=jax.ShapeDtypeStruct((num_chunks, nq, bt), out_dtype),
        grid_spec=pltpu.PrefetchScalarGridSpec(
            num_scalar_prefetch=0,
            grid=(num_chunks,),
            in_specs=[
                pl.BlockSpec((bt, nq, d_model), lambda i: (i, 0, 0)),   # queries
                pl.BlockSpec((bt, nk, d_model), lambda i: (i, 0, 0)),   # keys
                pl.BlockSpec((bt, nk, d_model), lambda i: (i, 0, 0)),   # values
                full_spec(wq), full_spec(bq),
                full_spec(wk), full_spec(bk),
                full_spec(wvo), full_spec(bvo), full_spec(bo),
            ],
            out_specs=pl.BlockSpec((1, nq, bt), lambda i: (i, 0, 0)),
        ),
        compiler_params=pltpu.CompilerParams(
            dimension_semantics=("parallel",),
            # Per-step working set is only a few MiB at the default target_rows;
            # 48 MiB leaves headroom on every generation (<= v7x's 64 MiB VMEM).
            vmem_limit_bytes=48 * 1024 * 1024,
        ),
    )(queries, keys, values, wq, bq, wk, bk, wvo, bvo, bo)

    # (num_chunks, nq, bt) -> (b_pad, nq, 1), trim the padded batch rows.
    out = out.transpose(0, 2, 1).reshape(b_pad, nq, 1)
    return out[:b_s]


def xavier_uniform(key, fan_in, fan_out, dtype=jnp.float32):
    # Matches torch.nn.init.xavier_uniform_ for a (fan_out, fan_in) Linear weight;
    # returned in the transposed (fan_in, fan_out) layout for x @ W.
    bound = math.sqrt(6.0 / (fan_in + fan_out))
    return jax.random.uniform(key, (fan_in, fan_out), dtype, minval=-bound, maxval=bound)


def init_params(key, d_model, d_k, d_v, h):
    k1, k2, k3, k4 = jax.random.split(key, 4)
    return {
        "wq": xavier_uniform(k1, d_model, h * d_k),
        "bq": jnp.zeros((h * d_k,), jnp.float32),
        "wk": xavier_uniform(k2, d_model, h * d_k),
        "bk": jnp.zeros((h * d_k,), jnp.float32),
        "wv": xavier_uniform(k3, d_model, h * d_v),
        "bv": jnp.zeros((h * d_v,), jnp.float32),
        "wo": xavier_uniform(k4, h * d_v, 1),
        "bo": jnp.zeros((1,), jnp.float32),
    }


def reference(queries, keys, values, params, *, h, d_k, d_v):
    # Pure-JAX reference mirroring the PyTorch forward (mask/weights = None).
    b_s, nq, _ = queries.shape
    nk = keys.shape[1]
    q = (queries @ params["wq"] + params["bq"]).reshape(b_s, nq, h, d_k).transpose(0, 2, 1, 3)
    k = (keys @ params["wk"] + params["bk"]).reshape(b_s, nk, h, d_k).transpose(0, 2, 3, 1)
    v = (values @ params["wv"] + params["bv"]).reshape(b_s, nk, h, d_v).transpose(0, 2, 1, 3)
    att = jnp.matmul(q, k) / math.sqrt(d_k)
    att = jax.nn.softmax(att, axis=-1)
    out = jnp.matmul(att, v).transpose(0, 2, 1, 3).reshape(b_s, nq, h * d_v)
    return out @ params["wo"] + params["bo"]


if __name__ == "__main__":
    d_model, d_k, d_v, h = 32, 16, 16, 4
    b_s, nq, nk = 2, 8, 8

    key = jax.random.PRNGKey(0)
    kq, kk, kv, kp = jax.random.split(key, 4)
    queries = jax.random.normal(kq, (b_s, nq, d_model), jnp.float32)
    keys = jax.random.normal(kk, (b_s, nk, d_model), jnp.float32)
    values = jax.random.normal(kv, (b_s, nk, d_model), jnp.float32)
    params = init_params(kp, d_model, d_k, d_v, h)

    ref = reference(queries, keys, values, params, h=h, d_k=d_k, d_v=d_v)

    # f32 compute path (default; exact algebra, exact division in the softmax
    # normalization).  The bf16 fast path (compute_dtype=jnp.bfloat16) is for
    # v6e/v7x hardware and is intentionally not exercised here.
    out = score_dot_product_attention(queries, keys, values, params,
                                      h=h, d_k=d_k, d_v=d_v,
                                      compute_dtype=jnp.float32)
    out = jax.block_until_ready(out)
    assert out.shape == (b_s, nq, 1), out.shape
    err = float(jnp.max(jnp.abs(out - ref)))
    assert jnp.allclose(out, ref, atol=1e-3, rtol=1e-3), err

    print("KERNEL_OK")
</pallas_src>

<mosaic_0001>
module attributes {stable_mosaic.version = 11 : i64} {
  func.func @kernel(%arg0: i32, %arg1: memref<8x8x32xf32, #tpu.memory_space<vmem>>, %arg2: memref<8x8x32xf32, #tpu.memory_space<vmem>>, %arg3: memref<8x8x32xf32, #tpu.memory_space<vmem>>, %arg4: memref<32x64xf32, #tpu.memory_space<vmem>>, %arg5: memref<1x64xf32, #tpu.memory_space<vmem>>, %arg6: memref<32x64xf32, #tpu.memory_space<vmem>>, %arg7: memref<1x64xf32, #tpu.memory_space<vmem>>, %arg8: memref<32x4xf32, #tpu.memory_space<vmem>>, %arg9: memref<1x4xf32, #tpu.memory_space<vmem>>, %arg10: memref<1x1xf32, #tpu.memory_space<vmem>>, %arg11: memref<1x8x8xf32, #tpu.memory_space<vmem>>) attributes {dimension_semantics = [#tpu.dimension_semantics<parallel>], iteration_bounds = array<i64: 1>, scalar_prefetch = 0 : i64, scratch_operands = 0 : i64, tpu.core_type = #tpu.core_type<tc>, window_params = [{transform_indices = @transform_0, window_bounds = array<i64: 8, 8, 32>}, {transform_indices = @transform_1, window_bounds = array<i64: 8, 8, 32>}, {transform_indices = @transform_2, window_bounds = array<i64: 8, 8, 32>}, {pipeline_mode = #tpu.pipeline_mode<synchronous>, transform_indices = @transform_3, window_bounds = array<i64: 32, 64>}, {pipeline_mode = #tpu.pipeline_mode<synchronous>, transform_indices = @transform_4, window_bounds = array<i64: 1, 64>}, {pipeline_mode = #tpu.pipeline_mode<synchronous>, transform_indices = @transform_5, window_bounds = array<i64: 32, 64>}, {pipeline_mode = #tpu.pipeline_mode<synchronous>, transform_indices = @transform_6, window_bounds = array<i64: 1, 64>}, {pipeline_mode = #tpu.pipeline_mode<synchronous>, transform_indices = @transform_7, window_bounds = array<i64: 32, 4>}, {pipeline_mode = #tpu.pipeline_mode<synchronous>, transform_indices = @transform_8, window_bounds = array<i64: 1, 4>}, {pipeline_mode = #tpu.pipeline_mode<synchronous>, transform_indices = @transform_9, window_bounds = array<i64: 1, 1>}, {transform_indices = @transform_10, window_bounds = array<i64: 1, 8, 8>}]} {
    %c0 = arith.constant 0 : index
    %c0_0 = arith.constant 0 : index
    %c0_1 = arith.constant 0 : index
    %0 = vector.load %arg1[%c0, %c0_0, %c0_1] : memref<8x8x32xf32, #tpu.memory_space<vmem>>, vector<8x8x32xf32>
    %1 = vector.shape_cast %0 : vector<8x8x32xf32> to vector<64x32xf32>
    %c0_2 = arith.constant 0 : index
    %c0_3 = arith.constant 0 : index
    %c0_4 = arith.constant 0 : index
    %2 = vector.load %arg2[%c0_2, %c0_3, %c0_4] : memref<8x8x32xf32, #tpu.memory_space<vmem>>, vector<8x8x32xf32>
    %3 = vector.shape_cast %2 : vector<8x8x32xf32> to vector<64x32xf32>
    %c0_5 = arith.constant 0 : index
    %c0_6 = arith.constant 0 : index
    %c0_7 = arith.constant 0 : index
    %4 = vector.load %arg3[%c0_5, %c0_6, %c0_7] : memref<8x8x32xf32, #tpu.memory_space<vmem>>, vector<8x8x32xf32>
    %5 = vector.shape_cast %4 : vector<8x8x32xf32> to vector<64x32xf32>
    %c0_8 = arith.constant 0 : index
    %c0_9 = arith.constant 0 : index
    %6 = vector.load %arg4[%c0_8, %c0_9] : memref<32x64xf32, #tpu.memory_space<vmem>>, vector<32x64xf32>
    %cst = arith.constant dense<0.000000e+00> : vector<64x64xf32>
    %7 = tpu.matmul %1, %6, %cst {dimension_numbers = #tpu.dot_dimension_numbers<[1], [0], [0], [1], [0, 0, 1, 1], [], []>} : vector<64x32xf32>, vector<32x64xf32>, vector<64x64xf32> -> vector<64x64xf32>
    %c0_10 = arith.constant 0 : index
    %c0_11 = arith.constant 0 : index
    %8 = vector.load %arg5[%c0_10, %c0_11] : memref<1x64xf32, #tpu.memory_space<vmem>>, vector<1x64xf32>
    %9 = vector.broadcast %8 : vector<1x64xf32> to vector<64x64xf32>
    %10 = arith.addf %7, %9 : vector<64x64xf32>
    %c0_12 = arith.constant 0 : index
    %c0_13 = arith.constant 0 : index
    %11 = vector.load %arg6[%c0_12, %c0_13] : memref<32x64xf32, #tpu.memory_space<vmem>>, vector<32x64xf32>
    %cst_14 = arith.constant dense<0.000000e+00> : vector<64x64xf32>
    %12 = tpu.matmul %3, %11, %cst_14 {dimension_numbers = #tpu.dot_dimension_numbers<[1], [0], [0], [1], [0, 0, 1, 1], [], []>} : vector<64x32xf32>, vector<32x64xf32>, vector<64x64xf32> -> vector<64x64xf32>
    %c0_15 = arith.constant 0 : index
    %c0_16 = arith.constant 0 : index
    %13 = vector.load %arg7[%c0_15, %c0_16] : memref<1x64xf32, #tpu.memory_space<vmem>>, vector<1x64xf32>
    %14 = vector.broadcast %13 : vector<1x64xf32> to vector<64x64xf32>
    %15 = arith.addf %12, %14 : vector<64x64xf32>
    %c0_17 = arith.constant 0 : index
    %c0_18 = arith.constant 0 : index
    %16 = vector.load %arg8[%c0_17, %c0_18] : memref<32x4xf32, #tpu.memory_space<vmem>>, vector<32x4xf32>
    %cst_19 = arith.constant dense<0.000000e+00> : vector<64x4xf32>
    %17 = tpu.matmul %5, %16, %cst_19 {dimension_numbers = #tpu.dot_dimension_numbers<[1], [0], [0], [1], [0, 0, 1, 1], [], []>} : vector<64x32xf32>, vector<32x4xf32>, vector<64x4xf32> -> vector<64x4xf32>
    %c0_20 = arith.constant 0 : index
    %c0_21 = arith.constant 0 : index
    %18 = vector.load %arg9[%c0_20, %c0_21] : memref<1x4xf32, #tpu.memory_space<vmem>>, vector<1x4xf32>
    %19 = vector.broadcast %18 : vector<1x4xf32> to vector<64x4xf32>
    %20 = arith.addf %17, %19 : vector<64x4xf32>
    %21 = vector.shape_cast %20 : vector<64x4xf32> to vector<8x8x4xf32>
    %cst_22 = arith.constant 0.000000e+00 : f32
    %22 = vector.broadcast %cst_22 : f32 to vector<8x8x1xf32>
    %23 = vector.extract_strided_slice %10 {offsets = [0, 0], sizes = [64, 16], strides = [1, 1]} : vector<64x64xf32> to vector<64x16xf32>
    %24 = vector.shape_cast %23 : vector<64x16xf32> to vector<8x8x16xf32>
    %25 = vector.extract_strided_slice %15 {offsets = [0, 0], sizes = [64, 16], strides = [1, 1]} : vector<64x64xf32> to vector<64x16xf32>
    %26 = vector.shape_cast %25 : vector<64x16xf32> to vector<8x8x16xf32>
    "tpu.trace_start"() <{level = 10 : i32, message = "bqd,bkd->bqk"}> : () -> ()
    %cst_23 = arith.constant dense<0.000000e+00> : vector<8x8x8xf32>
    %27 = tpu.matmul %24, %26, %cst_23 {dimension_numbers = #tpu.dot_dimension_numbers<[2], [2], [1], [1], [0, 0, 0, 1, 1, 1], [0], [0]>} : vector<8x8x16xf32>, vector<8x8x16xf32>, vector<8x8x8xf32> -> vector<8x8x8xf32>
    "tpu.trace_stop"() : () -> ()
    %cst_24 = arith.constant 2.500000e-01 : f32
    %28 = vector.broadcast %cst_24 : f32 to vector<8x8x8xf32>
    %29 = arith.mulf %27, %28 : vector<8x8x8xf32>
    %cst_25 = arith.constant dense<0xFF800000> : vector<8x8xf32>
    %30 = vector.multi_reduction <maximumf>, %29, %cst_25 [2] : vector<8x8x8xf32> to vector<8x8xf32>
    %31 = vector.shape_cast %30 : vector<8x8xf32> to vector<8x8x1xf32>
    %32 = vector.broadcast %31 : vector<8x8x1xf32> to vector<8x8x8xf32>
    %33 = arith.subf %29, %32 : vector<8x8x8xf32>
    %34 = math.exp %33 : vector<8x8x8xf32>
    %cst_26 = arith.constant dense<0.000000e+00> : vector<8x8xf32>
    %35 = vector.multi_reduction <add>, %34, %cst_26 [2] : vector<8x8x8xf32> to vector<8x8xf32>
    %36 = vector.shape_cast %35 : vector<8x8xf32> to vector<8x8x1xf32>
    %37 = vector.extract_strided_slice %21 {offsets = [0, 0, 0], sizes = [8, 8, 1], strides = [1, 1, 1]} : vector<8x8x4xf32> to vector<8x8x1xf32>
    "tpu.trace_start"() <{level = 10 : i32, message = "bqk,bkj->bqj"}> : () -> ()
    %cst_27 = arith.constant dense<0.000000e+00> : vector<8x8x1xf32>
    %38 = tpu.matmul %34, %37, %cst_27 {dimension_numbers = #tpu.dot_dimension_numbers<[2], [1], [1], [2], [0, 0, 0, 1, 1, 2], [0], [0]>} : vector<8x8x8xf32>, vector<8x8x1xf32>, vector<8x8x1xf32> -> vector<8x8x1xf32>
    "tpu.trace_stop"() : () -> ()
    %39 = arith.divf %38, %36 : vector<8x8x1xf32>
    %40 = arith.addf %22, %39 : vector<8x8x1xf32>
    %41 = vector.extract_strided_slice %10 {offsets = [0, 16], sizes = [64, 16], strides = [1, 1]} : vector<64x64xf32> to vector<64x16xf32>
    %42 = vector.shape_cast %41 : vector<64x16xf32> to vector<8x8x16xf32>
    %43 = vector.extract_strided_slice %15 {offsets = [0, 16], sizes = [64, 16], strides = [1, 1]} : vector<64x64xf32> to vector<64x16xf32>
    %44 = vector.shape_cast %43 : vector<64x16xf32> to vector<8x8x16xf32>
    "tpu.trace_start"() <{level = 10 : i32, message = "bqd,bkd->bqk"}> : () -> ()
    %cst_28 = arith.constant dense<0.000000e+00> : vector<8x8x8xf32>
    %45 = tpu.matmul %42, %44, %cst_28 {dimension_numbers = #tpu.dot_dimension_numbers<[2], [2], [1], [1], [0, 0, 0, 1, 1, 1], [0], [0]>} : vector<8x8x16xf32>, vector<8x8x16xf32>, vector<8x8x8xf32> -> vector<8x8x8xf32>
    "tpu.trace_stop"() : () -> ()
    %cst_29 = arith.constant 2.500000e-01 : f32
    %46 = vector.broadcast %cst_29 : f32 to vector<8x8x8xf32>
    %47 = arith.mulf %45, %46 : vector<8x8x8xf32>
    %cst_30 = arith.constant dense<0xFF800000> : vector<8x8xf32>
    %48 = vector.multi_reduction <maximumf>, %47, %cst_30 [2] : vector<8x8x8xf32> to vector<8x8xf32>
    %49 = vector.shape_cast %48 : vector<8x8xf32> to vector<8x8x1xf32>
    %50 = vector.broadcast %49 : vector<8x8x1xf32> to vector<8x8x8xf32>
    %51 = arith.subf %47, %50 : vector<8x8x8xf32>
    %52 = math.exp %51 : vector<8x8x8xf32>
    %cst_31 = arith.constant dense<0.000000e+00> : vector<8x8xf32>
    %53 = vector.multi_reduction <add>, %52, %cst_31 [2] : vector<8x8x8xf32> to vector<8x8xf32>
    %54 = vector.shape_cast %53 : vector<8x8xf32> to vector<8x8x1xf32>
    %55 = vector.extract_strided_slice %21 {offsets = [0, 0, 1], sizes = [8, 8, 1], strides = [1, 1, 1]} : vector<8x8x4xf32> to vector<8x8x1xf32>
    "tpu.trace_start"() <{level = 10 : i32, message = "bqk,bkj->bqj"}> : () -> ()
    %cst_32 = arith.constant dense<0.000000e+00> : vector<8x8x1xf32>
    %56 = tpu.matmul %52, %55, %cst_32 {dimension_numbers = #tpu.dot_dimension_numbers<[2], [1], [1], [2], [0, 0, 0, 1, 1, 2], [0], [0]>} : vector<8x8x8xf32>, vector<8x8x1xf32>, vector<8x8x1xf32> -> vector<8x8x1xf32>
    "tpu.trace_stop"() : () -> ()
    %57 = arith.divf %56, %54 : vector<8x8x1xf32>
    %58 = arith.addf %40, %57 : vector<8x8x1xf32>
    %59 = vector.extract_strided_slice %10 {offsets = [0, 32], sizes = [64, 16], strides = [1, 1]} : vector<64x64xf32> to vector<64x16xf32>
    %60 = vector.shape_cast %59 : vector<64x16xf32> to vector<8x8x16xf32>
    %61 = vector.extract_strided_slice %15 {offsets = [0, 32], sizes = [64, 16], strides = [1, 1]} : vector<64x64xf32> to vector<64x16xf32>
    %62 = vector.shape_cast %61 : vector<64x16xf32> to vector<8x8x16xf32>
    "tpu.trace_start"() <{level = 10 : i32, message = "bqd,bkd->bqk"}> : () -> ()
    %cst_33 = arith.constant dense<0.000000e+00> : vector<8x8x8xf32>
    %63 = tpu.matmul %60, %62, %cst_33 {dimension_numbers = #tpu.dot_dimension_numbers<[2], [2], [1], [1], [0, 0, 0, 1, 1, 1], [0], [0]>} : vector<8x8x16xf32>, vector<8x8x16xf32>, vector<8x8x8xf32> -> vector<8x8x8xf32>
    "tpu.trace_stop"() : () -> ()
    %cst_34 = arith.constant 2.500000e-01 : f32
    %64 = vector.broadcast %cst_34 : f32 to vector<8x8x8xf32>
    %65 = arith.mulf %63, %64 : vector<8x8x8xf32>
    %cst_35 = arith.constant dense<0xFF800000> : vector<8x8xf32>
    %66 = vector.multi_reduction <maximumf>, %65, %cst_35 [2] : vector<8x8x8xf32> to vector<8x8xf32>
    %67 = vector.shape_cast %66 : vector<8x8xf32> to vector<8x8x1xf32>
    %68 = vector.broadcast %67 : vector<8x8x1xf32> to vector<8x8x8xf32>
    %69 = arith.subf %65, %68 : vector<8x8x8xf32>
    %70 = math.exp %69 : vector<8x8x8xf32>
    %cst_36 = arith.constant dense<0.000000e+00> : vector<8x8xf32>
    %71 = vector.multi_reduction <add>, %70, %cst_36 [2] : vector<8x8x8xf32> to vector<8x8xf32>
    %72 = vector.shape_cast %71 : vector<8x8xf32> to vector<8x8x1xf32>
    %73 = vector.extract_strided_slice %21 {offsets = [0, 0, 2], sizes = [8, 8, 1], strides = [1, 1, 1]} : vector<8x8x4xf32> to vector<8x8x1xf32>
    "tpu.trace_start"() <{level = 10 : i32, message = "bqk,bkj->bqj"}> : () -> ()
    %cst_37 = arith.constant dense<0.000000e+00> : vector<8x8x1xf32>
    %74 = tpu.matmul %70, %73, %cst_37 {dimension_numbers = #tpu.dot_dimension_numbers<[2], [1], [1], [2], [0, 0, 0, 1, 1, 2], [0], [0]>} : vector<8x8x8xf32>, vector<8x8x1xf32>, vector<8x8x1xf32> -> vector<8x8x1xf32>
    "tpu.trace_stop"() : () -> ()
    %75 = arith.divf %74, %72 : vector<8x8x1xf32>
    %76 = arith.addf %58, %75 : vector<8x8x1xf32>
    %77 = vector.extract_strided_slice %10 {offsets = [0, 48], sizes = [64, 16], strides = [1, 1]} : vector<64x64xf32> to vector<64x16xf32>
    %78 = vector.shape_cast %77 : vector<64x16xf32> to vector<8x8x16xf32>
    %79 = vector.extract_strided_slice %15 {offsets = [0, 48], sizes = [64, 16], strides = [1, 1]} : vector<64x64xf32> to vector<64x16xf32>
    %80 = vector.shape_cast %79 : vector<64x16xf32> to vector<8x8x16xf32>
    "tpu.trace_start"() <{level = 10 : i32, message = "bqd,bkd->bqk"}> : () -> ()
    %cst_38 = arith.constant dense<0.000000e+00> : vector<8x8x8xf32>
    %81 = tpu.matmul %78, %80, %cst_38 {dimension_numbers = #tpu.dot_dimension_numbers<[2], [2], [1], [1], [0, 0, 0, 1, 1, 1], [0], [0]>} : vector<8x8x16xf32>, vector<8x8x16xf32>, vector<8x8x8xf32> -> vector<8x8x8xf32>
    "tpu.trace_stop"() : () -> ()
    %cst_39 = arith.constant 2.500000e-01 : f32
    %82 = vector.broadcast %cst_39 : f32 to vector<8x8x8xf32>
    %83 = arith.mulf %81, %82 : vector<8x8x8xf32>
    %cst_40 = arith.constant dense<0xFF800000> : vector<8x8xf32>
    %84 = vector.multi_reduction <maximumf>, %83, %cst_40 [2] : vector<8x8x8xf32> to vector<8x8xf32>
    %85 = vector.shape_cast %84 : vector<8x8xf32> to vector<8x8x1xf32>
    %86 = vector.broadcast %85 : vector<8x8x1xf32> to vector<8x8x8xf32>
    %87 = arith.subf %83, %86 : vector<8x8x8xf32>
    %88 = math.exp %87 : vector<8x8x8xf32>
    %cst_41 = arith.constant dense<0.000000e+00> : vector<8x8xf32>
    %89 = vector.multi_reduction <add>, %88, %cst_41 [2] : vector<8x8x8xf32> to vector<8x8xf32>
    %90 = vector.shape_cast %89 : vector<8x8xf32> to vector<8x8x1xf32>
    %91 = vector.extract_strided_slice %21 {offsets = [0, 0, 3], sizes = [8, 8, 1], strides = [1, 1, 1]} : vector<8x8x4xf32> to vector<8x8x1xf32>
    "tpu.trace_start"() <{level = 10 : i32, message = "bqk,bkj->bqj"}> : () -> ()
    %cst_42 = arith.constant dense<0.000000e+00> : vector<8x8x1xf32>
    %92 = tpu.matmul %88, %91, %cst_42 {dimension_numbers = #tpu.dot_dimension_numbers<[2], [1], [1], [2], [0, 0, 0, 1, 1, 2], [0], [0]>} : vector<8x8x8xf32>, vector<8x8x1xf32>, vector<8x8x1xf32> -> vector<8x8x1xf32>
    "tpu.trace_stop"() : () -> ()
    %93 = arith.divf %92, %90 : vector<8x8x1xf32>
    %94 = arith.addf %76, %93 : vector<8x8x1xf32>
    %95 = vector.shape_cast %94 : vector<8x8x1xf32> to vector<8x8xf32>
    %c0_43 = arith.constant 0 : index
    %c0_44 = arith.constant 0 : index
    %96 = vector.load %arg10[%c0_43, %c0_44] : memref<1x1xf32, #tpu.memory_space<vmem>>, vector<1x1xf32>
    %97 = vector.broadcast %96 : vector<1x1xf32> to vector<8x8xf32>
    %98 = arith.addf %95, %97 : vector<8x8xf32>
    %99 = tpu.transpose %98, [1, 0] : vector<8x8xf32> -> vector<8x8xf32>
    %c0_45 = arith.constant 0 : index
    %c0_46 = arith.constant 0 : index
    %c0_47 = arith.constant 0 : index
    %100 = vector.load %arg11[%c0_45, %c0_46, %c0_47] : memref<1x8x8xf32, #tpu.memory_space<vmem>>, vector<1x8x8xf32>
    %101 = vector.shape_cast %100 : vector<1x8x8xf32> to vector<8x8xf32>
    %102 = vector.shape_cast %99 : vector<8x8xf32> to vector<1x8x8xf32>
    tpu.vector_store %arg11[%c0_45, %c0_46, %c0_47], %102 {strides = array<i32>} : memref<1x8x8xf32, #tpu.memory_space<vmem>>, vector<1x8x8xf32>,
    return
  }
  func.func @transform_0(%arg0: i32) -> (i32, i32, i32) {
    %c0_i32 = arith.constant 0 : i32
    %c0_i32_0 = arith.constant 0 : i32
    %c0_i32_1 = arith.constant 0 : i32
    return %arg0, %c0_i32, %c0_i32_0 : i32, i32, i32
  }
  func.func @transform_1(%arg0: i32) -> (i32, i32, i32) {
    %c0_i32 = arith.constant 0 : i32
    %c0_i32_0 = arith.constant 0 : i32
    %c0_i32_1 = arith.constant 0 : i32
    return %arg0, %c0_i32, %c0_i32_0 : i32, i32, i32
  }
  func.func @transform_2(%arg0: i32) -> (i32, i32, i32) {
    %c0_i32 = arith.constant 0 : i32
    %c0_i32_0 = arith.constant 0 : i32
    %c0_i32_1 = arith.constant 0 : i32
    return %arg0, %c0_i32, %c0_i32_0 : i32, i32, i32
  }
  func.func @transform_3(%arg0: i32) -> (i32, i32) {
    %c0_i32 = arith.constant 0 : i32
    %c0_i32_0 = arith.constant 0 : i32
    %c0_i32_1 = arith.constant 0 : i32
    return %c0_i32, %c0_i32_0 : i32, i32
  }
  func.func @transform_4(%arg0: i32) -> (i32, i32) {
    %c0_i32 = arith.constant 0 : i32
    %c0_i32_0 = arith.constant 0 : i32
    %c0_i32_1 = arith.constant 0 : i32
    return %c0_i32, %c0_i32_0 : i32, i32
  }
  func.func @transform_5(%arg0: i32) -> (i32, i32) {
    %c0_i32 = arith.constant 0 : i32
    %c0_i32_0 = arith.constant 0 : i32
    %c0_i32_1 = arith.constant 0 : i32
    return %c0_i32, %c0_i32_0 : i32, i32
  }
  func.func @transform_6(%arg0: i32) -> (i32, i32) {
    %c0_i32 = arith.constant 0 : i32
    %c0_i32_0 = arith.constant 0 : i32
    %c0_i32_1 = arith.constant 0 : i32
    return %c0_i32, %c0_i32_0 : i32, i32
  }
  func.func @transform_7(%arg0: i32) -> (i32, i32) {
    %c0_i32 = arith.constant 0 : i32
    %c0_i32_0 = arith.constant 0 : i32
    %c0_i32_1 = arith.constant 0 : i32
    return %c0_i32, %c0_i32_0 : i32, i32
  }
  func.func @transform_8(%arg0: i32) -> (i32, i32) {
    %c0_i32 = arith.constant 0 : i32
    %c0_i32_0 = arith.constant 0 : i32
    %c0_i32_1 = arith.constant 0 : i32
    return %c0_i32, %c0_i32_0 : i32, i32
  }
  func.func @transform_9(%arg0: i32) -> (i32, i32) {
    %c0_i32 = arith.constant 0 : i32
    %c0_i32_0 = arith.constant 0 : i32
    %c0_i32_1 = arith.constant 0 : i32
    return %c0_i32, %c0_i32_0 : i32, i32
  }
  func.func @transform_10(%arg0: i32) -> (i32, i32, i32) {
    %c0_i32 = arith.constant 0 : i32
    %c0_i32_0 = arith.constant 0 : i32
    %c0_i32_1 = arith.constant 0 : i32
    return %arg0, %c0_i32, %c0_i32_0 : i32, i32, i32
  }
}

</mosaic_0001>

<bundles_post_ra>
// kernel: tpu_custom_call.1
= control target key start
LH: loop header
LB: loop body
LE: loop exit
PB: predicated region body
PF: predicated region fallthrough
CT: control target
= control target key end

     0   :  { %s8132_s0 = inlined_call_operand.hbm [shape: f32[8,8,32], index: 0, kind: input, shape index: {}]   ;;  %s8133_s1 = inlined_call_operand.hbm [shape: f32[8,8,32], index: 1, kind: input, shape index: {}]   ;;  %s8134_s2 = inlined_call_operand.hbm [shape: f32[8,8,32], index: 2, kind: input, shape index: {}]   ;;  %s8135_s3 = inlined_call_operand.vmem [shape: f32[32,64], index: 3, kind: input, shape index: {}]   ;;  %s8136_s4 = inlined_call_operand.vmem [shape: f32[1,64], index: 4, kind: input, shape index: {}]   ;;  %s8137_s5 = inlined_call_operand.hbm [shape: f32[32,64], index: 5, kind: input, shape index: {}]   ;;  %s8138_s6 = inlined_call_operand.vmem [shape: f32[1,64], index: 6, kind: input, shape index: {}]   ;;  %s8139_s7 = inlined_call_operand.vmem [shape: f32[32,4], index: 7, kind: input, shape index: {}]   ;;  %s8140_s8 = inlined_call_operand.vmem [shape: f32[1,4], index: 8, kind: input, shape index: {}]   ;;  %s8141_s9 = inlined_call_operand.<no memory space> [shape: f32[1,1], index: 9, kind: input, shape index: {}]   ;;  %s8142_s10 = inlined_call_operand.hbm [shape: f32[1,8,8], index: 10, kind: output, shape index: {}]  }
   0x1   :  { %v15_v0 = vstv %s8141_s9 }
   0x2   :  { %16 = vst [vmem:[#allocation2] sm:$0x1] %v15_v0 }
   0x3   :  { %17 = vsyncpa [#allocation4], 0 }
   0x4   :  { %18 = vsyncpa [#allocation7], 0 }
   0x5   :  { %19 = vsyncpa [#allocation10], 0 }
   0x6   :  { %20 = vsyncpa [#allocation5], 0  ;;  %s6957_s15 = smov [#allocation6]   ;;  %s6958_s17 = smov [#allocation3]  }
   0x7   :  { %s38_s16 = sshll.u32 %s6957_s15, 4  ;;  %s26_s18 = sshll.u32 %s6958_s17, 4  ;;  %s39_s16 = int_to_ptr.vmem [resolvable:$true] %s38_s16  ;;  %s7031_s18 = int_to_ptr.vmem [resolvable:$true] %s26_s18 }
   0x8   :  { %s6839_s21 = scalar_lea.hbm %s8133_s1, 1024 }
   0x9   :  { %p6840_p0 = scmp.ne.s32.totalorder %s8133_s1, %s6839_s21  ;;  %p6843_p1 = scmp.lt.u32.totalorder %s6839_s21, %s8133_s1 }
   0xb   :  { %p6845_p2 = pnand %p6843_p1, %p6840_p0 }
   0xd   :  { %6848 = shalt.err (!%p6845_p2)
}
   0xe   :  { %s6849_s25 = scalar_lea.vmem %s39_s16, 1024  ;;  %p6854_p4 = scmp.lt.s32.totalorder %s39_s16, %s39_s16 }
   0xf   :  { %p6850_p3 = scmp.ne.s32.totalorder %s39_s16, %s6849_s25  ;;  %p6855_p5 = scmp.lt.s32.totalorder %s6849_s25, %s6849_s25 }
  0x11   :  { %p6856_p6 = por %p6855_p5, %p6854_p4 }
  0x13   :  { %p6857_p7 = pnand %p6856_p6, %p6850_p3 }
  0x15   :  { %6860 = shalt.err (!%p6857_p7)
}
  0x16   :  { %s6959_s26 = smov 128   ;;  %s6960_s27 = smov 8  }
  0x17   :  { %44 = dma.hbm_to_vmem [thread:$0]  %s8133_s1, 1024, %s39_s16, [#allocation7], %s6959_s26, %s6959_s26, %s6960_s27  }
  0x18   :  { %s6861_s12 = scalar_lea.hbm %s8132_s0, 1024 }
  0x19   :  { %p6862_p8 = scmp.ne.s32.totalorder %s8132_s0, %s6861_s12  ;;  %p6865_p9 = scmp.lt.u32.totalorder %s6861_s12, %s8132_s0 }
  0x1b   :  { %p6867_p10 = pnand %p6865_p9, %p6862_p8 }
  0x1d   :  { %6870 = shalt.err (!%p6867_p10)
}
  0x1e   :  { %s6871_s19 = scalar_lea.vmem %s7031_s18, 1024  ;;  %p6876_p12 = scmp.lt.s32.totalorder %s7031_s18, %s7031_s18 }
  0x1f   :  { %p6872_p11 = scmp.ne.s32.totalorder %s7031_s18, %s6871_s19  ;;  %p6877_p13 = scmp.lt.s32.totalorder %s6871_s19, %s6871_s19 }
  0x21   :  { %p6878_p0 = por %p6877_p13, %p6876_p12 }
  0x23   :  { %p6879_p1 = pnand %p6878_p0, %p6872_p11 }
  0x25   :  { %6882 = shalt.err (!%p6879_p1)
}
  0x26   :  { %32 = dma.hbm_to_vmem [thread:$0]  %s8132_s0, 1024, %s7031_s18, [#allocation4], %s6959_s26, %s6959_s26, %s6960_s27  }
  0x27   :  { %s6961_s20 = smov [#allocation8]   ;;  %s6962_s22 = smov [#allocation9]  }
  0x28   :  { %s50_s21 = sshll.u32 %s6961_s20, 4  ;;  %s66_s23 = sshll.u32 %s6962_s22, 4  ;;  %s51_s21 = int_to_ptr.vmem [resolvable:$true] %s50_s21  ;;  %s7068_s23 = int_to_ptr.vmem [resolvable:$true] %s66_s23 }
  0x29   :  { %s6883_s25 = scalar_lea.hbm %s8134_s2, 1024 }
  0x2a   :  { %p6884_p2 = scmp.ne.s32.totalorder %s8134_s2, %s6883_s25  ;;  %p6887_p3 = scmp.lt.u32.totalorder %s6883_s25, %s8134_s2 }
  0x2c   :  { %p6889_p4 = pnand %p6887_p3, %p6884_p2 }
  0x2e   :  { %6892 = shalt.err (!%p6889_p4)
}
  0x2f   :  { %s6893_s0 = scalar_lea.vmem %s51_s21, 1024  ;;  %p6898_p6 = scmp.lt.s32.totalorder %s51_s21, %s51_s21 }
  0x30   :  { %p6894_p5 = scmp.ne.s32.totalorder %s51_s21, %s6893_s0  ;;  %p6899_p7 = scmp.lt.s32.totalorder %s6893_s0, %s6893_s0 }
  0x32   :  { %p6900_p8 = por %p6899_p7, %p6898_p6 }
  0x34   :  { %p6901_p9 = pnand %p6900_p8, %p6894_p5 }
  0x36   :  { %6904 = shalt.err (!%p6901_p9)
}
  0x37   :  { %56 = dma.hbm_to_vmem [thread:$0]  %s8134_s2, 1024, %s51_s21, [#allocation7], %s6959_s26, %s6959_s26, %s6960_s27  }
  0x38   :  { %s6905_s15 = scalar_lea.hbm %s8137_s5, 512 }
  0x39   :  { %p6906_p10 = scmp.ne.s32.totalorder %s8137_s5, %s6905_s15  ;;  %p6909_p11 = scmp.lt.u32.totalorder %s6905_s15, %s8137_s5 }
  0x3b   :  { %p6911_p12 = pnand %p6909_p11, %p6906_p10 }
  0x3d   :  { %6914 = shalt.err (!%p6911_p12)
}
  0x3e   :  { %s6915_s20 = scalar_lea.vmem %s7068_s23, 512  ;;  %p6920_p0 = scmp.lt.s32.totalorder %s7068_s23, %s7068_s23 }
  0x3f   :  { %p6916_p13 = scmp.ne.s32.totalorder %s7068_s23, %s6915_s20  ;;  %p6921_p1 = scmp.lt.s32.totalorder %s6915_s20, %s6915_s20 }
  0x41   :  { %p6922_p2 = por %p6921_p1, %p6920_p0 }
  0x43   :  { %p6923_p3 = pnand %p6922_p2, %p6916_p13 }
  0x45   :  { %6926 = shalt.err (!%p6923_p3)
}
  0x46   :  { %72 = dma.hbm_to_vmem [thread:$0]  %s8137_s5, 512, %s7068_s23, [#allocation10], %s6959_s26, %s6959_s26, %s6960_s27  }
  0x47   :  { %6949 = dma.done.wait [#allocation4], 1024  }
  0x48   :  { %6950 = vsyncadd [#allocation4], 4294966272 }
  0x49   :  { %6951 = dma.done.wait [#allocation7], 2048  }
  0x4a   :  { %6952 = vsyncadd [#allocation7], 4294965248 }
  0x4b   :  { %6953 = dma.done.wait [#allocation10], 512  }
  0x4c   :  { %6954 = vsyncadd [#allocation10], 4294966784  ;;  %v258_v1 = vld [vmem:[#allocation9] sm:$0xff]  ;;  %v259_v2 = vld [vmem:[#allocation9 + $0x8] sm:$0xff]  ;;  %vm128_vm0 = vcmask 261120   ;;  %v8143_v39 = vmov 0.0  }
  0x4d   :  { %v117_v3 = vld [vmem:[%s8135_s3] sm:$0xff]  ;;  %v6677_v4 = vpack.c.bf16 %v259_v2, %v258_v1  ;;  %v118_v5 = vld [vmem:[%s8135_s3 + $0x8] sm:$0xff]  ;;  %v260_v6 = vld [vmem:[#allocation9 + $0x10] sm:$0xff]  ;;  %vm6964_vm1 = vmmov 0   ;;  %vm538_vm2 = vcmask 130048   ;;  %s6965_s17 = smov 112  }
  0x4e   :  { %v261_v7 = vld [vmem:[#allocation9 + $0x18] sm:$0xff]  ;;  %v6669_v8 = vpack.c.bf16 %v118_v5, %v117_v3  ;;  %v119_v10 = vld [vmem:[%s8135_s3 + $0x10] sm:$0xff]  ;;  %v101_v12 = vld [vmem:[#allocation6] sm:$0xff]  ;;  %vm1155_vm3 = vcmask 64512   ;;  %s6967_s19 = smov 96   ;;  %s6968_s1 = smov 126  }
  0x4f   :  { %v6681_v9 = vpack.c.bf16 %v261_v7, %v260_v6  ;;  %v120_v11 = vld [vmem:[%s8135_s3 + $0x18] sm:$0xff]  ;;  %6678 = vmatprep.subr.bf16.mxu1 %v6677_v4  ;;  %6317 = vmatprep.mubr.msk.f32.mxu1 %vm128_vm0, %v101_v12  ;;  %v93_v14 = vld [vmem:[#allocation3] sm:$0xff]  ;;  %v102_v15 = vld [vmem:[#allocation6 + $0x8] sm:$0xff]  ;;  %s6969_s16 = smov 80   ;;  %s6970_s20 = smov 125   ;;  %vm5936_vm4 = vcmask 1041409  }
  0x50   :  { %v6673_v13 = vpack.c.bf16 %v120_v11, %v119_v10  ;;  %6680 = vmatpush3.bf16.msra.mxu1 %v6677_v4  ;;  %6670 = vmatprep.subr.bf16.mxu0 %v6669_v8  ;;  %v398_v16 = vld [vmem:[%s8139_s7] sm:$0xff]  ;;  %v399_v17 = vld [vmem:[%s8139_s7 + $0x8] sm:$0xff]  ;;  %v400_v18 = vld [vmem:[%s8139_s7 + $0x10] sm:$0xff]  ;;  %vm5938_vm5 = vcmask 1042434   ;;  %vm5940_vm6 = vcmask 1043459   ;;  %vm5942_vm7 = vcmask 1044484  }
  0x51   :  { %6672 = vmatpush3.bf16.msra.mxu0 %v6669_v8  ;;  %6682 = vmatprep.subr.bf16.mxu1 %v6681_v9  ;;  %v94_v19 = vld [vmem:[#allocation3 + $0x8] sm:$0xff]  ;;  %v103_v20 = vld [vmem:[#allocation6 + $0x10] sm:$0xff]  ;;  %v6685_v21 = vpack.c.bf16 %v399_v17, %v398_v16  ;;  %v104_v25 = vld [vmem:[#allocation6 + $0x18] sm:$0xff]  ;;  %vm5944_vm8 = vcmask 1045509   ;;  %vm5946_vm9 = vcmask 1046534   ;;  %vm5948_vm10 = vcmask 1047559  }
  0x52   :  { %6674 = vmatprep.subr.bf16.mxu0 %v6673_v13  ;;  %6297 = vmatprep.mubr.msk.f32.mxu0 %vm128_vm0, %v93_v14  ;;  %v401_v22 = vld [vmem:[%s8139_s7 + $0x18] sm:$0xff]  ;;  %v105_v27 = vld [vmem:[#allocation6 + $0x20] sm:$0xff]  ;;  %v106_v29 = vld [vmem:[#allocation6 + $0x28] sm:$0xff]  ;;  %s6972_s2 = smov [#allocation11]  }
  0x53   :  { %v95_v23 = vld [vmem:[#allocation3 + $0x10] sm:$0xff]  ;;  %v6689_v24 = vpack.c.bf16 %v401_v22, %v400_v18  ;;  %v96_v26 = vld [vmem:[#allocation3 + $0x18] sm:$0xff]  ;;  %v97_v28 = vld [vmem:[#allocation3 + $0x20] sm:$0xff]  ;;  %s5990_s21 = sshll.u32 %s6972_s2, 4  ;;  %s5991_s21 = int_to_ptr.vmem [resolvable:$true] %s5990_s21 }
  0x54   :  { %6684 = vmatpush3.bf16.msra.mxu1 %v6681_v9  ;;  %v98_v30 = vld [vmem:[#allocation3 + $0x28] sm:$0xff]  ;;  %v107_v31 = vld [vmem:[#allocation6 + $0x30] sm:$0xff]  ;;  %v108_v33 = vld [vmem:[#allocation6 + $0x38] sm:$0xff]  ;;  %s6927_s22 = scalar_lea.vmem %s5991_s21, 128  ;;  %p6932_p5 = scmp.lt.s32.totalorder %s5991_s21, %s5991_s21 }
  0x55   :  { %6676 = vmatpush3.bf16.msra.mxu0 %v6673_v13  ;;  %v99_v32 = vld [vmem:[#allocation3 + $0x30] sm:$0xff]  ;;  %v100_v34 = vld [vmem:[#allocation3 + $0x38] sm:$0xff]  ;;  %v109_v35 = vld [vmem:[#allocation8] sm:$0xff]  ;;  %6349 = vmatprep.subr.mxu1 %v8143_v39  ;;  %p6928_p4 = scmp.ne.s32.totalorder %s5991_s21, %s6927_s22  ;;  %p6933_p6 = scmp.lt.s32.totalorder %s6927_s22, %s6927_s22 }
  0x56   :  { %6686 = vmatprep.subr.bf16.mxu0 %v6685_v21  ;;  %v110_v36 = vld [vmem:[#allocation8 + $0x8] sm:$0xff]  ;;  %v111_v37 = vld [vmem:[#allocation8 + $0x10] sm:$0xff]  ;;  %v112_v38 = vld [vmem:[#allocation8 + $0x18] sm:$0xff] }
  0x57   :  { %6318 = vmatmul.mubr.msk.f32.vlgmr.msra.gmra.mrb[0].mxu1 %vm128_vm0, %v102_v15  ;;  %v113_v40 = vld [vmem:[#allocation8 + $0x20] sm:$0xff]  ;;  %v114_v41 = vld [vmem:[#allocation8 + $0x28] sm:$0xff]  ;;  %v115_v42 = vld [vmem:[#allocation8 + $0x30] sm:$0xff]  ;;  %p6934_p7 = por %p6933_p6, %p6932_p5 }
  0x58   :  { %6298 = vmatmul.mubr.msk.f32.vlgmr.msra.gmra.mrb[0].mxu0 %vm128_vm0, %v94_v19  ;;  %6320 = vmatprep.mubr.msk.f32.mxu1 %vm128_vm0, %v103_v20  ;;  %v116_v43 = vld [vmem:[#allocation8 + $0x38] sm:$0xff] }
  0x59   :  { %6300 = vmatprep.mubr.msk.f32.mxu0 %vm128_vm0, %v95_v23  ;;  %6688 = vmatpush3.bf16.msra.mxu0 %v6685_v21  ;;  %v6010_v44 = vld [vmem:[%s8138_s6] ss:$0 sm:$0xff]  ;;  %p6935_p8 = pnand %p6934_p7, %p6928_p4 }
  0x5a   :  { %6690 = vmatprep.subr.bf16.mxu0 %v6689_v24  ;;  %v7165_v46 = vld [vmem:[%s8136_s4] ss:$0 sm:$0xff] }
  0x5b   :  { %6321 = vmatmul.mubr.msk.f32.gmra.mrb[2].mxu1 %vm128_vm0, %v104_v25  ;;  %v7265_v15 = vld [vmem:[%s8140_s8] ss:$0 sm:$0xff]  ;;  %s6966_s8 = smov 127  }
  0x5c   :  { %6301 = vmatmul.mubr.msk.f32.gmra.mrb[2].mxu0 %vm128_vm0, %v96_v26  ;;  %6323 = vmatprep.mubr.msk.f32.mxu1 %vm128_vm0, %v105_v27 }
  0x5d   :  { %6303 = vmatprep.mubr.msk.f32.mxu0 %vm128_vm0, %v97_v28  ;;  %6692 = vmatpush3.bf16.msra.mxu0 %v6689_v24 }
  0x5e   :  { %6369 = vmatprep.subr.mxu0 %v8143_v39 }
  0x5f   :  { %6324 = vmatmul.mubr.msk.f32.gmra.mrb[4].mxu1 %vm128_vm0, %v106_v29 }
  0x60   :  { %6304 = vmatmul.mubr.msk.f32.gmra.mrb[4].mxu0 %vm128_vm0, %v98_v30  ;;  %6326 = vmatprep.mubr.msk.f32.mxu1 %vm128_vm0, %v107_v31 }
  0x61   :  { %6306 = vmatprep.mubr.msk.f32.mxu0 %vm128_vm0, %v99_v32 }
  0x63   :  { %6327 = vmatmul.mubr.msk.f32.gmra.mrb[6].mxu1 %vm128_vm0, %v108_v33 }
  0x64   :  { %6307 = vmatmul.mubr.msk.f32.gmra.mrb[6].mxu0 %vm128_vm0, %v100_v34  ;;  %6351 = vmatprep.mubr.msk.f32.mxu1 %vm6964_vm1, %v8143_v39 }
  0x65   :  { %6337 = vmatprep.mubr.msk.f32.mxu0 %vm128_vm0, %v109_v35 }
  0x68   :  { %6338 = vmatmul.mubr.msk.f32.vlgmr.msra.gmra.mrb[8].mxu0 %vm128_vm0, %v110_v36 }
  0x69   :  { %6340 = vmatprep.mubr.msk.f32.mxu0 %vm128_vm0, %v111_v37 }
  0x6c   :  { %6341 = vmatmul.mubr.msk.f32.gmra.mrb[10].mxu0 %vm128_vm0, %v112_v38 }
  0x6d   :  { %6343 = vmatprep.mubr.msk.f32.mxu0 %vm128_vm0, %v113_v40 }
  0x70   :  { %6344 = vmatmul.mubr.msk.f32.gmra.mrb[12].mxu0 %vm128_vm0, %v114_v41 }
  0x71   :  { %6346 = vmatprep.mubr.msk.f32.mxu0 %vm128_vm0, %v115_v42 }
  0x74   :  { %6347 = vmatmul.mubr.msk.f32.gmra.mrb[14].mxu0 %vm128_vm0, %v116_v43 }
  0x75   :  { %6371 = vmatprep.mubr.msk.f32.mxu0 %vm6964_vm1, %v8143_v39 }
 0x12a   :  { %v6319_v45 = vpop.f32.mrb[0].mxu1 }
 0x12b   :  { %v7167_v47 = vadd.f32 %v6319_v45, %v6010_v44  ;;  %v359_v48 = vpop.f32.mrb[1].mxu1  ;;  %v6299_v49 = vpop.f32.mrb[0].mxu0 }
 0x12c   :  { %v7169_v50 = vadd.f32 %v6010_v44, %v359_v48  ;;  %v219_v51 = vpop.f32.mrb[1].mxu0  ;;  %v7174_v52 = vadd.f32 %v6299_v49, %v7165_v46 }
 0x12d   :  { %1916 = vrot.lane.b32.xlu1 %v7167_v47, %s6965_s17  ;;  %v7177_v53 = vadd.f32 %v7165_v46, %v219_v51 }
 0x12e   :  { %1838 = vrot.lane.b32.xlu0 %v7169_v50, %s6965_s17  ;;  %6350 = vmatpush3.xpose.msk.msra.mxu1 %vm538_vm2, %v7169_v50  ;;  %v6322_v54 = vpop.f32.mrb[2].mxu1 }
 0x12f   :  { %v369_v55 = vpop.f32.mrb[3].mxu1  ;;  %6354 = vmatprep.subr.mxu1 %v8143_v39  ;;  %v6302_v56 = vpop.f32.mrb[2].mxu0  ;;  %v7214_v5 = vadd.f32 %v6322_v54, %v6010_v44 }
 0x130   :  { %v229_v57 = vpop.f32.mrb[3].mxu0  ;;  %v7188_v58 = vadd.f32 %v6010_v44, %v369_v55  ;;  %v7233_v10 = vadd.f32 %v6302_v56, %v7165_v46 }
 0x131   :  { %6352 = vmatmul.mubr.msk.f32.vlgmr.msra.gmra.mrb[8].mxu1 %vm538_vm2, %v7177_v53  ;;  %1914 = vrot.lane.b32.xlu1 %v7174_v52, %s6965_s17  ;;  %v7198_v0 = vadd.f32 %v7165_v46, %v229_v57 }
 0x132   :  { %v6325_v59 = vpop.f32.mrb[4].mxu1  ;;  %6355 = vmatpush3.xpose.msk.msra.mxu1 %vm538_vm2, %v7167_v47  ;;  %6356 = vmatprep.mubr.msk.f32.mxu1 %vm6964_vm1, %v8143_v39 }
 0x133   :  { %v379_v60 = vpop.f32.mrb[5].mxu1  ;;  %v6305_v61 = vpop.f32.mrb[4].mxu0  ;;  %6359 = vmatprep.subr.mxu1 %v8143_v39  ;;  %v7223_v8 = vadd.f32 %v6325_v59, %v6010_v44 }
 0x134   :  { %v7195_v62 = vadd.f32 %v6010_v44, %v379_v60  ;;  %v239_v63 = vpop.f32.mrb[5].mxu0  ;;  %v7242_v12 = vadd.f32 %v6305_v61, %v7165_v46 }
 0x135   :  { %6357 = vmatmul.mubr.msk.f32.vlgmr.msra.gmra.mrb[10].mxu1 %vm538_vm2, %v7174_v52  ;;  %v7203_v1 = vadd.f32 %v7165_v46, %v239_v63  ;;  %1836 = vrot.lane.b32.xlu1 %v7177_v53, %s6965_s17 }
 0x136   :  { %6360 = vmatpush3.xpose.msk.msra.mxu1 %vm538_vm2, %v7188_v58  ;;  %6370 = vmatpush3.xpose.msk.msra.mxu0 %vm538_vm2, %v7195_v62  ;;  %v6328_v2 = vpop.f32.mrb[6].mxu1 }
 0x137   :  { %6361 = vmatprep.mubr.msk.f32.mxu1 %vm6964_vm1, %v8143_v39  ;;  %6364 = vmatprep.subr.mxu1 %v8143_v39  ;;  %v389_v3 = vpop.f32.mrb[7].mxu1  ;;  %v6308_v4 = vpop.f32.mrb[6].mxu0  ;;  %v7246_v13 = vadd.f32 %v6328_v2, %v6010_v44 }
 0x138   :  { %v7216_v6 = vadd.f32 %v6010_v44, %v389_v3  ;;  %6379 = vmatprep.subr.mxu0 %v8143_v39  ;;  %v249_v7 = vpop.f32.mrb[7].mxu0  ;;  %v7258_v14 = vadd.f32 %v6308_v4, %v7165_v46 }
 0x139   :  { %6362 = vmatmul.mubr.msk.f32.vlgmr.msra.gmra.mrb[12].mxu1 %vm538_vm2, %v7198_v0  ;;  %6372 = vmatmul.mubr.msk.f32.vlgmr.msra.gmra.mrb[16].mxu0 %vm538_vm2, %v7203_v1  ;;  %v7230_v9 = vadd.f32 %v7165_v46, %v249_v7 }
 0x13a   :  { %6365 = vmatpush3.xpose.msk.msra.mxu1 %vm538_vm2, %v7214_v5  ;;  %6366 = vmatprep.mubr.msk.f32.mxu1 %vm6964_vm1, %v8143_v39 }
 0x13b   :  { %6380 = vmatpush3.xpose.msk.msra.mxu0 %vm538_vm2, %v7216_v6  ;;  %6381 = vmatprep.mubr.msk.f32.mxu0 %vm6964_vm1, %v8143_v39  ;;  %v6339_v11 = vpop.f32.mrb[8].mxu0 }
 0x13c   :  { %6374 = vmatprep.subr.mxu1 %v8143_v39  ;;  %6389 = vmatprep.subr.mxu0 %v8143_v39  ;;  %v7272_v16 = vadd.f32 %v6339_v11, %v7265_v15  ;;  %v499_v17 = vpop.f32.mrb[9].mxu0 }
 0x13d   :  { %6367 = vmatmul.mubr.msk.f32.vlgmr.msra.gmra.mrb[14].mxu1 %vm538_vm2, %v7233_v10  ;;  %v7282_v18 = vadd.f32 %v7265_v15, %v499_v17 }
 0x13e   :  { %6382 = vmatmul.mubr.msk.f32.vlgmr.msra.gmra.mrb[18].mxu0 %vm538_vm2, %v7230_v9  ;;  %6375 = vmatpush3.xpose.msk.msra.mxu1 %vm538_vm2, %v7223_v8 }
 0x13f   :  { %6376 = vmatprep.mubr.msk.f32.mxu1 %vm6964_vm1, %v8143_v39  ;;  %6384 = vmatprep.subr.mxu1 %v8143_v39  ;;  %v7284_v19 = vpop.f32.mrb[10].mxu0 }
 0x140   :  { %6391 = vmatprep.mubr.msk.f32.mxu0 %vm6964_vm1, %v8143_v39  ;;  %v7286_v20 = vpop.f32.mrb[11].mxu0  ;;  %6390 = vmatpush3.msra.mxu0 %v7282_v18 }
 0x141   :  { %6377 = vmatmul.mubr.msk.f32.vlgmr.msra.gmra.mrb[16].mxu1 %vm538_vm2, %v7242_v12  ;;  %6399 = vmatprep.subr.mxu0 %v8143_v39 }
 0x142   :  { %6385 = vmatpush3.xpose.msk.msra.mxu1 %vm538_vm2, %v7246_v13  ;;  %6386 = vmatprep.mubr.msk.f32.mxu1 %vm6964_vm1, %v8143_v39 }
 0x143   :  { %6394 = vmatprep.subr.mxu1 %v8143_v39  ;;  %v7288_v21 = vpop.f32.mrb[12].mxu0 }
 0x144   :  { %v519_v22 = vpop.f32.mrb[13].mxu0 }
 0x145   :  { %6387 = vmatmul.mubr.msk.f32.vlgmr.msra.gmra.mrb[18].mxu1 %vm538_vm2, %v7258_v14  ;;  %v7339_v61 = vadd.f32 %v7265_v15, %v519_v22 }
 0x146   :  { %6395 = vmatpush3.msra.mxu1 %v7272_v16  ;;  %6396 = vmatprep.mubr.msk.f32.mxu1 %vm6964_vm1, %v8143_v39 }
 0x147   :  { %6404 = vmatprep.subr.mxu1 %v8143_v39  ;;  %v7292_v23 = vpop.f32.mrb[14].mxu0 }
 0x148   :  { %v529_v24 = vpop.f32.mrb[15].mxu0 }
 0x149   :  { %v7344_v63 = vadd.f32 %v7265_v15, %v529_v24 }
 0x19f   :  { %v7358_v4 = vpop.permute.xlu1 %1916 }
 0x1a0   :  { %v7362_v7 = vpop.permute.xlu0 %1838 }
 0x1a3   :  { %v7364_v11 = vpop.permute.xlu1 %1914 }
 0x204   :  { %v611_v25 = vpop.f32.mrb[8].mxu1 }
 0x205   :  { %v7294_v26 = vmul.f32 0.25, %v611_v25  ;;  %v6353_v27 = vpop.f32.mrb[9].mxu1  ;;  %v7371_v25 = vpop.permute.xlu1 %1836 }
 0x207   :  { %v1156_v28 = vsel %vm1155_vm3, %v7294_v26, -inf }
 0x208   :  { %1157 = vmax.xlane.f32.xlu0 %v1156_v28  ;;  %v687_v29 = vpop.f32.mrb[10].mxu1 }
 0x209   :  { %v7298_v30 = vmul.f32 0.25, %v687_v29  ;;  %v6358_v31 = vpop.f32.mrb[11].mxu1 }
 0x20b   :  { %v1159_v32 = vsel %vm1155_vm3, %v7298_v30, -inf }
 0x20c   :  { %v915_v33 = vpop.f32.mrb[16].mxu0  ;;  %1160 = vmax.xlane.f32.xlu0 %v1159_v32  ;;  %v763_v34 = vpop.f32.mrb[12].mxu1 }
 0x20d   :  { %v7302_v35 = vmul.f32 0.25, %v915_v33  ;;  %v7304_v36 = vmul.f32 0.25, %v763_v34  ;;  %v6363_v37 = vpop.f32.mrb[13].mxu1  ;;  %v6373_v38 = vpop.f32.mrb[17].mxu0 }
 0x20e   :  { %v7382_v37 = vadd.f32 %v7265_v15, %v7286_v20 }
 0x20f   :  { %v1168_v40 = vsel %vm1155_vm3, %v7302_v35, -inf  ;;  %v1162_v41 = vsel %vm1155_vm3, %v7304_v36, -inf }
 0x210   :  { %1169 = vmax.xlane.f32.xlu0 %v1168_v40  ;;  %1163 = vmax.xlane.f32.xlu1 %v1162_v41  ;;  %v839_v42 = vpop.f32.mrb[14].mxu1  ;;  %v7418_v40 = vadd.f32 %v7292_v23, %v7265_v15 }
 0x211   :  { %v6368_v43 = vpop.f32.mrb[15].mxu1  ;;  %v1067_v44 = vpop.f32.mrb[18].mxu0  ;;  %v7316_v55 = vmul.f32 0.25, %v839_v42 }
 0x212   :  { %v6383_v45 = vpop.f32.mrb[19].mxu0  ;;  %v7314_v54 = vmul.f32 0.25, %v1067_v44 }
 0x213   :  { %v1165_v59 = vsel %vm1155_vm3, %v7316_v55, -inf }
 0x214   :  { %v991_v46 = vpop.f32.mrb[16].mxu1  ;;  %v1174_v56 = vsel %vm1155_vm3, %v7314_v54, -inf }
 0x215   :  { %v6378_v48 = vpop.f32.mrb[17].mxu1  ;;  %v7320_v57 = vmul.f32 0.25, %v991_v46 }
 0x217   :  { %v1171_v60 = vsel %vm1155_vm3, %v7320_v57, -inf }
 0x218   :  { %v1143_v49 = vpop.f32.mrb[18].mxu1 }
 0x219   :  { %v6388_v51 = vpop.f32.mrb[19].mxu1  ;;  %v7350_v2 = vmul.f32 0.25, %v1143_v49 }
 0x21b   :  { %v1177_v3 = vsel %vm1155_vm3, %v7350_v2, -inf }
 0x221   :  { %2072 = vrot.lane.b32.xlu1 %v7214_v5, %s6965_s17 }
 0x226   :  { %1994 = vrot.lane.b32.xlu0 %v7188_v58, %s6965_s17 }
 0x245   :  { %1175 = vmax.xlane.f32.xlu0 %v1174_v56  ;;  %1166 = vmax.xlane.f32.xlu1 %v1165_v59 }
 0x249   :  { %1172 = vmax.xlane.f32.xlu1 %v1171_v60 }
 0x25a   :  { %2070 = vrot.lane.b32.xlu1 %v7233_v10, %s6965_s17 }
 0x25b   :  { %1992 = vrot.lane.b32.xlu0 %v7198_v0, %s6965_s17 }
 0x25f   :  { %2150 = vrot.lane.b32.xlu0 %v7195_v62, %s6965_s17 }
 0x263   :  { %2148 = vrot.lane.b32.xlu0 %v7203_v1, %s6965_s17 }
 0x267   :  { %2306 = vrot.lane.b32.xlu0 %v7216_v6, %s6965_s17 }
 0x26b   :  { %2304 = vrot.lane.b32.xlu0 %v7230_v9, %s6965_s17 }
 0x26f   :  { %2541 = vrot.lane.b32.xlu0 %v7282_v18, %s6966_s8 }
 0x273   :  { %2849 = vrot.lane.b32.xlu0 %v7339_v61, %s6966_s8 }
 0x277   :  { %3003 = vrot.lane.b32.xlu0 %v7344_v63, %s6966_s8 }
 0x27b   :  { %3182 = vrot.lane.b32.xlu0 %v7169_v50, %s6967_s19 }
 0x27e   :  { %1178 = vmax.xlane.f32.xlu1 %v1177_v3 }
 0x27f   :  { %3180 = vrot.lane.b32.xlu0 %v7177_v53, %s6967_s19 }
 0x28f   :  { %2228 = vrot.lane.b32.xlu1 %v7223_v8, %s6965_s17 }
 0x293   :  { %2226 = vrot.lane.b32.xlu1 %v7242_v12, %s6965_s17 }
 0x295   :  { %v1158_v17 = vpop.xlane.xlu0 %1157 }
 0x296   :  { %v1180_v22 = vsub.f32 %v7294_v26, %v1158_v17 }
 0x297   :  { %2384 = vrot.lane.b32.xlu1 %v7246_v13, %s6965_s17 }
 0x298   :  { %v1188_v24 = vmul.f32 1.442695, %v1180_v22 }
 0x299   :  { %v1161_v27 = vpop.xlane.xlu0 %1160 }
 0x29a   :  { %6711 = vpow2.f32 %v1188_v24  ;;  %v1181_v28 = vsub.f32 %v7298_v30, %v1161_v27 }
 0x29b   :  { %2382 = vrot.lane.b32.xlu1 %v7258_v14, %s6965_s17 }
 0x29c   :  { %v1190_v29 = vmul.f32 1.442695, %v1181_v28 }
 0x29d   :  { %v1170_v31 = vpop.xlane.xlu0 %1169  ;;  %v1164_v32 = vpop.xlane.xlu1 %1163 }
 0x29e   :  { %6713 = vpow2.f32 %v1190_v29  ;;  %v1182_v33 = vsub.f32 %v7304_v36, %v1164_v32  ;;  %v1184_v26 = vsub.f32 %v7302_v35, %v1170_v31  ;;  %v7390_v36 = vadd.f32 %v7284_v19, %v7265_v15 }
 0x29f   :  { %2618 = vrot.lane.b32.xlu1 %v7272_v16, %s6966_s8  ;;  %v7404_v19 = vadd.f32 %v7288_v21, %v7265_v15 }
 0x2a0   :  { %v1192_v34 = vmul.f32 1.442695, %v1182_v33  ;;  %v1196_v30 = vmul.f32 1.442695, %v1184_v26 }
 0x2a1   :  { %v1995_v15 = vpop.permute.xlu0 %1994  ;;  %v7440_v23 = vpop.permute.xlu1 %2072 }
 0x2a2   :  { %6715 = vpow2.f32 %v1192_v34 }
 0x2a3   :  { %2695 = vrot.lane.b32.xlu1 %v7382_v37, %s6966_s8  ;;  %6717 = vpow2.f32 %v1196_v30 }
 0x2a4   :  { %v7386_v38 = vpop.eup %6711 }
 0x2a5   :  { %6392 = vmatmul.mubr.msk.f32.vlgmr.msra.gmra.mrb[20].mxu0 %vm1155_vm3, %v7386_v38 }
 0x2a6   :  { %6400 = vmatpush3.msra.mxu0 %v7382_v37  ;;  %6401 = vmatprep.mubr.msk.f32.mxu0 %vm6964_vm1, %v8143_v39 }
 0x2a7   :  { %2772 = vrot.lane.b32.xlu1 %v7390_v36, %s6966_s8  ;;  %6409 = vmatprep.subr.mxu0 %v8143_v39 }
 0x2a8   :  { %v7400_v20 = vpop.eup %6713 }
 0x2a9   :  { %6397 = vmatmul.mubr.msk.f32.vlgmr.msra.gmra.mrb[20].mxu1 %vm1155_vm3, %v7400_v20 }
 0x2aa   :  { %6405 = vmatpush3.msra.mxu1 %v7390_v36  ;;  %6406 = vmatprep.mubr.msk.f32.mxu1 %vm6964_vm1, %v8143_v39 }
 0x2ab   :  { %2926 = vrot.lane.b32.xlu1 %v7404_v19, %s6966_s8  ;;  %6414 = vmatprep.subr.mxu1 %v8143_v39 }
 0x2ac   :  { %v7414_v35 = vpop.eup %6715 }
 0x2ad   :  { %6402 = vmatmul.mubr.msk.f32.vlgmr.msra.gmra.mrb[22].mxu0 %vm1155_vm3, %v7414_v35  ;;  %v7428_v21 = vpop.eup %6717 }
 0x2ae   :  { %6410 = vmatpush3.msra.mxu0 %v7339_v61  ;;  %6411 = vmatprep.mubr.msk.f32.mxu0 %vm6964_vm1, %v8143_v39 }
 0x2af   :  { %3080 = vrot.lane.b32.xlu1 %v7418_v40, %s6966_s8  ;;  %6419 = vmatprep.subr.mxu0 %v8143_v39 }
 0x2b1   :  { %6412 = vmatmul.mubr.msk.f32.vlgmr.msra.gmra.mrb[24].mxu0 %vm1155_vm3, %v7428_v21 }
 0x2b2   :  { %6420 = vmatpush3.msra.mxu0 %v7344_v63  ;;  %6421 = vmatprep.mubr.msk.f32.mxu0 %vm6964_vm1, %v8143_v39 }
 0x2b3   :  { %3260 = vrot.lane.b32.xlu1 %v7167_v47, %s6967_s19  ;;  %6429 = vmatprep.subr.mxu0 %v8143_v39 }
 0x2b7   :  { %3258 = vrot.lane.b32.xlu1 %v7174_v52, %s6967_s19 }
 0x2d2   :  { %v1176_v41 = vpop.xlane.xlu0 %1175  ;;  %v1167_v42 = vpop.xlane.xlu1 %1166 }
 0x2d3   :  { %v1186_v43 = vsub.f32 %v7314_v54, %v1176_v41  ;;  %v1183_v44 = vsub.f32 %v7316_v55, %v1167_v42 }
 0x2d5   :  { %v1200_v45 = vmul.f32 1.442695, %v1186_v43  ;;  %v1194_v46 = vmul.f32 1.442695, %v1183_v44 }
 0x2d6   :  { %v1993_v48 = vpop.permute.xlu0 %1992  ;;  %v1173_v49 = vpop.xlane.xlu1 %1172 }
 0x2d7   :  { %6719 = vpow2.f32 %v1200_v45  ;;  %v1185_v51 = vsub.f32 %v7320_v57, %v1173_v49 }
 0x2d8   :  { %6721 = vpow2.f32 %v1194_v46 }
 0x2d9   :  { %v1198_v56 = vmul.f32 1.442695, %v1185_v51 }
 0x2da   :  { %v2151_v59 = vpop.permute.xlu0 %2150  ;;  %v2071_v22 = vpop.permute.xlu1 %2070 }
 0x2db   :  { %6723 = vpow2.f32 %v1198_v56 }
 0x2de   :  { %v2149_v60 = vpop.permute.xlu0 %2148 }
 0x2e1   :  { %v7445_v3 = vpop.eup %6719 }
 0x2e2   :  { %v7447_v17 = vpop.eup %6721  ;;  %6422 = vmatmul.mubr.msk.f32.vlgmr.msra.gmra.mrb[26].mxu0 %vm1155_vm3, %v7445_v3  ;;  %v2307_v55 = vpop.permute.xlu0 %2306 }
 0x2e3   :  { %6407 = vmatmul.mubr.msk.f32.vlgmr.msra.gmra.mrb[22].mxu1 %vm1155_vm3, %v7447_v17  ;;  %6430 = vmatpush3.xpose.msk.msra.mxu0 %vm538_vm2, %v7362_v7 }
 0x2e4   :  { %6415 = vmatpush3.msra.mxu1 %v7404_v19  ;;  %6416 = vmatprep.mubr.msk.f32.mxu1 %vm6964_vm1, %v8143_v39 }
 0x2e5   :  { %v7458_v54 = vpop.eup %6723  ;;  %6424 = vmatprep.subr.mxu1 %v8143_v39  ;;  %6431 = vmatprep.mubr.msk.f32.mxu0 %vm6964_vm1, %v8143_v39 }
 0x2e6   :  { %6439 = vmatprep.subr.mxu0 %v8143_v39  ;;  %6432 = vmatmul.mubr.msk.f32.vlgmr.msra.gmra.mrb[28].mxu0 %vm538_vm2, %v7371_v25  ;;  %v2305_v57 = vpop.permute.xlu0 %2304 }
 0x2e7   :  { %6417 = vmatmul.mubr.msk.f32.vlgmr.msra.gmra.mrb[24].mxu1 %vm1155_vm3, %v7458_v54  ;;  %6440 = vmatpush3.xpose.msk.msra.mxu0 %vm538_vm2, %v1995_v15 }
 0x2e8   :  { %6425 = vmatpush3.msra.mxu1 %v7418_v40  ;;  %6441 = vmatprep.mubr.msk.f32.mxu0 %vm6964_vm1, %v8143_v39 }
 0x2e9   :  { %6449 = vmatprep.subr.mxu0 %v8143_v39  ;;  %6426 = vmatprep.mubr.msk.f32.mxu1 %vm6964_vm1, %v8143_v39 }
 0x2ea   :  { %6442 = vmatmul.mubr.msk.f32.vlgmr.msra.gmra.mrb[30].mxu0 %vm538_vm2, %v1993_v48  ;;  %6434 = vmatprep.subr.mxu1 %v8143_v39  ;;  %v2542_v7 = vpop.permute.xlu0 %2541 }
 0x2eb   :  { %6450 = vmatpush3.xpose.msk.msra.mxu0 %vm538_vm2, %v2151_v59  ;;  %6451 = vmatprep.mubr.msk.f32.mxu0 %vm6964_vm1, %v8143_v39 }
 0x2ec   :  { %6459 = vmatprep.subr.mxu0 %v8143_v39 }
 0x2ee   :  { %6452 = vmatmul.mubr.msk.f32.vlgmr.msra.gmra.mrb[32].mxu0 %vm538_vm2, %v2149_v60 }
 0x2ef   :  { %6460 = vmatpush3.xpose.msk.msra.mxu0 %vm538_vm2, %v2307_v55  ;;  %6461 = vmatprep.mubr.msk.f32.mxu0 %vm6964_vm1, %v8143_v39 }
 0x2f0   :  { %6469 = vmatprep.subr.mxu0 %v8143_v39 }
 0x2f2   :  { %6462 = vmatmul.mubr.msk.f32.vlgmr.msra.gmra.mrb[34].mxu0 %vm538_vm2, %v2305_v57 }
 0x2f3   :  { %6470 = vmatpush3.msra.mxu0 %v2542_v7  ;;  %6471 = vmatprep.mubr.msk.f32.mxu0 %vm6964_vm1, %v8143_v39 }
 0x2f4   :  { %6479 = vmatprep.subr.mxu0 %v8143_v39 }
 0x30b   :  { %v1179_v24 = vpop.xlane.xlu1 %1178 }
 0x30c   :  { %v1187_v25 = vsub.f32 %v7350_v2, %v1179_v24 }
 0x30e   :  { %v1202_v27 = vmul.f32 1.442695, %v1187_v25 }
 0x30f   :  { %v2229_v28 = vpop.permute.xlu1 %2228 }
 0x310   :  { %6725 = vpow2.f32 %v1202_v27 }
 0x313   :  { %v2227_v29 = vpop.permute.xlu1 %2226 }
 0x317   :  { %v2385_v32 = vpop.permute.xlu1 %2384 }
 0x31a   :  { %v7491_v31 = vpop.eup %6725 }
 0x31b   :  { %6427 = vmatmul.mubr.msk.f32.vlgmr.msra.gmra.mrb[26].mxu1 %vm1155_vm3, %v7491_v31  ;;  %v2383_v2 = vpop.permute.xlu1 %2382 }
 0x31c   :  { %6435 = vmatpush3.xpose.msk.msra.mxu1 %vm538_vm2, %v7358_v4  ;;  %6436 = vmatprep.mubr.msk.f32.mxu1 %vm6964_vm1, %v8143_v39 }
 0x31d   :  { %6444 = vmatprep.subr.mxu1 %v8143_v39 }
 0x31f   :  { %6437 = vmatmul.mubr.msk.f32.vlgmr.msra.gmra.mrb[28].mxu1 %vm538_vm2, %v7364_v11  ;;  %v2619_v4 = vpop.permute.xlu1 %2618 }
 0x320   :  { %6445 = vmatpush3.xpose.msk.msra.mxu1 %vm538_vm2, %v7440_v23  ;;  %6446 = vmatprep.mubr.msk.f32.mxu1 %vm6964_vm1, %v8143_v39 }
 0x321   :  { %6454 = vmatprep.subr.mxu1 %v8143_v39 }
 0x323   :  { %6447 = vmatmul.mubr.msk.f32.vlgmr.msra.gmra.mrb[30].mxu1 %vm538_vm2, %v2071_v22 }
 0x324   :  { %6455 = vmatpush3.xpose.msk.msra.mxu1 %vm538_vm2, %v2229_v28  ;;  %6456 = vmatprep.mubr.msk.f32.mxu1 %vm6964_vm1, %v8143_v39 }
 0x325   :  { %6464 = vmatprep.subr.mxu1 %v8143_v39 }
 0x327   :  { %6457 = vmatmul.mubr.msk.f32.vlgmr.msra.gmra.mrb[32].mxu1 %vm538_vm2, %v2227_v29 }
 0x328   :  { %6465 = vmatpush3.xpose.msk.msra.mxu1 %vm538_vm2, %v2385_v32  ;;  %6466 = vmatprep.mubr.msk.f32.mxu1 %vm6964_vm1, %v8143_v39 }
 0x329   :  { %6474 = vmatprep.subr.mxu1 %v8143_v39 }
 0x32b   :  { %6467 = vmatmul.mubr.msk.f32.vlgmr.msra.gmra.mrb[34].mxu1 %vm538_vm2, %v2383_v2 }
 0x32c   :  { %6475 = vmatpush3.msra.mxu1 %v2619_v4  ;;  %6476 = vmatprep.mubr.msk.f32.mxu1 %vm6964_vm1, %v8143_v39 }
 0x32d   :  { %6484 = vmatprep.subr.mxu1 %v8143_v39 }
 0x378   :  { %v7521_v11 = vpop.f32.mrb[20].mxu0 }
 0x379   :  { %v6393_v33 = vpop.f32.mrb[21].mxu0 }
 0x37c   :  { %v7523_v26 = vpop.f32.mrb[20].mxu1 }
 0x37d   :  { %v6398_v34 = vpop.f32.mrb[21].mxu1 }
 0x380   :  { %v7525_v30 = vpop.f32.mrb[22].mxu0 }
 0x381   :  { %v6403_v15 = vpop.f32.mrb[23].mxu0 }
 0x384   :  { %v7527_v23 = vpop.f32.mrb[24].mxu0 }
 0x385   :  { %v6413_v41 = vpop.f32.mrb[25].mxu0 }
 0x3b5   :  { %v7529_v42 = vpop.f32.mrb[26].mxu0 }
 0x3b6   :  { %v7531_v43 = vpop.f32.mrb[22].mxu1  ;;  %v6423_v44 = vpop.f32.mrb[27].mxu0 }
 0x3b7   :  { %v6408_v45 = vpop.f32.mrb[23].mxu1 }
 0x3b9   :  { %v1910_v46 = vpop.f32.mrb[28].mxu0 }
 0x3ba   :  { %v7533_v48 = vpop.f32.mrb[24].mxu1  ;;  %v2460_v49 = vmul.f32 0.25, %v1910_v46  ;;  %v6433_v51 = vpop.f32.mrb[29].mxu0 }
 0x3bb   :  { %v6418_v56 = vpop.f32.mrb[25].mxu1 }
 0x3bc   :  { %v2468_v59 = vsel %vm1155_vm3, %v2460_v49, -inf }
 0x3bd   :  { %2469 = vmax.xlane.f32.xlu0 %v2468_v59  ;;  %v2066_v60 = vpop.f32.mrb[30].mxu0 }
 0x3be   :  { %v2462_v55 = vmul.f32 0.25, %v2066_v60  ;;  %v6443_v57 = vpop.f32.mrb[31].mxu0 }
 0x3c0   :  { %v2474_v7 = vsel %vm1155_vm3, %v2462_v55, -inf }
 0x3c1   :  { %2475 = vmax.xlane.f32.xlu0 %v2474_v7  ;;  %v2222_v22 = vpop.f32.mrb[32].mxu0 }
 0x3c2   :  { %v6453_v24 = vpop.f32.mrb[33].mxu0  ;;  %v7545_v44 = vmul.f32 0.25, %v2222_v22 }
 0x3c4   :  { %v2480_v56 = vsel %vm1155_vm3, %v7545_v44, -inf }
 0x3c5   :  { %v2378_v25 = vpop.f32.mrb[34].mxu0 }
 0x3c6   :  { %v6463_v27 = vpop.f32.mrb[35].mxu0  ;;  %v7559_v22 = vmul.f32 0.25, %v2378_v25 }
 0x3c7   :  { %v2850_v27 = vpop.permute.xlu0 %2849 }
 0x3c8   :  { %v2486_v24 = vsel %vm1155_vm3, %v7559_v22, -inf }
 0x3ee   :  { %v7537_v28 = vpop.f32.mrb[26].mxu1 }
 0x3ef   :  { %8145 = vst [vmem:[#allocation16_spill] sm:$0xff] %v7537_v28  ;;  %v6428_v29 = vpop.f32.mrb[27].mxu1 }
 0x3f0   :  { %v7563_v29 = vpop.permute.xlu0 %3003 }
 0x3f2   :  { %v1988_v32 = vpop.f32.mrb[28].mxu1 }
 0x3f3   :  { %v7539_v2 = vmul.f32 0.25, %v1988_v32  ;;  %v6438_v4 = vpop.f32.mrb[29].mxu1 }
 0x3f4   :  { %v7567_v32 = vpop.permute.xlu0 %3182 }
 0x3f5   :  { %v2471_v33 = vsel %vm1155_vm3, %v7539_v2, -inf }
 0x3f6   :  { %2472 = vmax.xlane.f32.xlu1 %v2471_v33  ;;  %v2144_v34 = vpop.f32.mrb[30].mxu1 }
 0x3f7   :  { %v7543_v15 = vmul.f32 0.25, %v2144_v34  ;;  %v6448_v41 = vpop.f32.mrb[31].mxu1 }
 0x3f8   :  { %v7569_v4 = vpop.permute.xlu0 %3180 }
 0x3f9   :  { %v2477_v45 = vsel %vm1155_vm3, %v7543_v15, -inf }
 0x3fa   :  { %2478 = vmax.xlane.f32.xlu0 %v2477_v45  ;;  %v2300_v46 = vpop.f32.mrb[32].mxu1 }
 0x3fb   :  { %v6458_v51 = vpop.f32.mrb[33].mxu1  ;;  %v7555_v57 = vmul.f32 0.25, %v2300_v46 }
 0x3fd   :  { %v2483_v7 = vsel %vm1155_vm3, %v7555_v57, -inf }
 0x3fe   :  { %2481 = vmax.xlane.f32.xlu0 %v2480_v56  ;;  %v2456_v59 = vpop.f32.mrb[34].mxu1 }
 0x3ff   :  { %v6468_v60 = vpop.f32.mrb[35].mxu1  ;;  %v7585_v56 = vmul.f32 0.25, %v2456_v59 }
 0x401   :  { %v2489_v59 = vsel %vm1155_vm3, %v7585_v56, -inf }
 0x407   :  { %3416 = vrot.lane.b32.xlu1 %v7214_v5, %s6967_s19 }
 0x414   :  { %3338 = vrot.lane.b32.xlu0 %v7188_v58, %s6967_s19 }
 0x42b   :  { %2484 = vmax.xlane.f32.xlu1 %v2483_v7 }
 0x433   :  { %2487 = vmax.xlane.f32.xlu0 %v2486_v24 }
 0x43c   :  { %3414 = vrot.lane.b32.xlu1 %v7233_v10, %s6967_s19 }
 0x449   :  { %3336 = vrot.lane.b32.xlu0 %v7198_v0, %s6967_s19 }
 0x44a   :  { %v2470_v33 = vpop.xlane.xlu0 %2469 }
 0x44b   :  { %v2492_v25 = vsub.f32 %v2460_v49, %v2470_v33  ;;  %v2696_v49 = vpop.permute.xlu1 %2695 }
 0x44d   :  { %v2500_v34 = vmul.f32 1.442695, %v2492_v25  ;;  %3494 = vrot.lane.b32.xlu0 %v7195_v62, %s6967_s19 }
 0x44e   :  { %v2476_v41 = vpop.xlane.xlu0 %2475 }
 0x44f   :  { %6727 = vpow2.f32 %v2500_v34  ;;  %v2494_v45 = vsub.f32 %v2462_v55, %v2476_v41  ;;  %v2773_v60 = vpop.permute.xlu1 %2772 }
 0x451   :  { %v2504_v46 = vmul.f32 1.442695, %v2494_v45  ;;  %3492 = vrot.lane.b32.xlu0 %v7203_v1, %s6967_s19 }
 0x453   :  { %6729 = vpow2.f32 %v2504_v46  ;;  %v2927_v7 = vpop.permute.xlu1 %2926 }
 0x455   :  { %3650 = vrot.lane.b32.xlu0 %v7216_v6, %s6967_s19 }
 0x457   :  { %v3081_v24 = vpop.permute.xlu1 %3080 }
 0x459   :  { %v7579_v51 = vpop.eup %6727  ;;  %3648 = vrot.lane.b32.xlu0 %v7230_v9, %s6967_s19 }
 0x45a   :  { %6472 = vmatmul.mubr.msk.f32.vlgmr.msra.gmra.mrb[36].mxu0 %vm1155_vm3, %v7579_v51 }
 0x45b   :  { %6480 = vmatpush3.msra.mxu0 %v2696_v49  ;;  %6481 = vmatprep.mubr.msk.f32.mxu0 %vm6964_vm1, %v8143_v39 }
 0x45c   :  { %6489 = vmatprep.subr.mxu0 %v8143_v39 }
 0x45d   :  { %v7590_v55 = vpop.eup %6729  ;;  %3884 = vrot.lane.b32.xlu0 %v7282_v18, %s6968_s1 }
 0x45e   :  { %6482 = vmatmul.mubr.msk.f32.vlgmr.msra.gmra.mrb[38].mxu0 %vm1155_vm3, %v7590_v55 }
 0x45f   :  { %6490 = vmatpush3.msra.mxu0 %v2850_v27  ;;  %6491 = vmatprep.mubr.msk.f32.mxu0 %vm6964_vm1, %v8143_v39  ;;  %v7615_v27 = vpop.permute.xlu1 %3260 }
 0x460   :  { %2490 = vmax.xlane.f32.xlu1 %v2489_v59  ;;  %6499 = vmatprep.subr.mxu0 %v8143_v39 }
 0x461   :  { %4188 = vrot.lane.b32.xlu0 %v7339_v61, %s6968_s1 }
 0x465   :  { %4340 = vrot.lane.b32.xlu0 %v7344_v63, %s6968_s1 }
 0x469   :  { %4518 = vrot.lane.b32.xlu0 %v7169_v50, %s6969_s16  ;;  %v7621_v50 = vpop.permute.xlu1 %3258 }
 0x46d   :  { %4516 = vrot.lane.b32.xlu0 %v7177_v53, %s6969_s16 }
 0x471   :  { %4674 = vrot.lane.b32.xlu0 %v7188_v58, %s6969_s16  ;;  %3572 = vrot.lane.b32.xlu1 %v7223_v8, %s6967_s19 }
 0x475   :  { %3570 = vrot.lane.b32.xlu1 %v7242_v12, %s6967_s19 }
 0x479   :  { %3728 = vrot.lane.b32.xlu1 %v7246_v13, %s6967_s19 }
 0x47d   :  { %3726 = vrot.lane.b32.xlu1 %v7258_v14, %s6967_s19 }
 0x481   :  { %3960 = vrot.lane.b32.xlu1 %v7272_v16, %s6968_s1 }
 0x483   :  { %v2473_v53 = vpop.xlane.xlu1 %2472 }
 0x484   :  { %v2493_v58 = vsub.f32 %v7539_v2, %v2473_v53 }
 0x485   :  { %4036 = vrot.lane.b32.xlu1 %v7382_v37, %s6968_s1 }
 0x486   :  { %v2502_v33 = vmul.f32 1.442695, %v2493_v58 }
 0x487   :  { %v2479_v25 = vpop.xlane.xlu0 %2478 }
 0x488   :  { %6731 = vpow2.f32 %v2502_v33  ;;  %v2495_v34 = vsub.f32 %v7543_v15, %v2479_v25 }
 0x489   :  { %4112 = vrot.lane.b32.xlu1 %v7390_v36, %s6968_s1 }
 0x48a   :  { %v2506_v41 = vmul.f32 1.442695, %v2495_v34 }
 0x48b   :  { %v2482_v45 = vpop.xlane.xlu0 %2481 }
 0x48c   :  { %6733 = vpow2.f32 %v2506_v41  ;;  %v2496_v46 = vsub.f32 %v7545_v44, %v2482_v45 }
 0x48d   :  { %4264 = vrot.lane.b32.xlu1 %v7404_v19, %s6968_s1 }
 0x48e   :  { %v2508_v2 = vmul.f32 1.442695, %v2496_v46 }
 0x490   :  { %6735 = vpow2.f32 %v2508_v2 }
 0x491   :  { %4416 = vrot.lane.b32.xlu1 %v7418_v40, %s6968_s1 }
 0x492   :  { %v7636_v49 = vpop.eup %6731 }
 0x493   :  { %6477 = vmatmul.mubr.msk.f32.vlgmr.msra.gmra.mrb[36].mxu1 %vm1155_vm3, %v7636_v49 }
 0x494   :  { %6485 = vmatpush3.msra.mxu1 %v2773_v60  ;;  %6486 = vmatprep.mubr.msk.f32.mxu1 %vm6964_vm1, %v8143_v39 }
 0x495   :  { %4596 = vrot.lane.b32.xlu1 %v7167_v47, %s6969_s16  ;;  %6494 = vmatprep.subr.mxu1 %v8143_v39  ;;  %v3417_v47 = vpop.permute.xlu1 %3416 }
 0x496   :  { %v7645_v15 = vpop.eup %6733 }
 0x497   :  { %6487 = vmatmul.mubr.msk.f32.vlgmr.msra.gmra.mrb[38].mxu1 %vm1155_vm3, %v7645_v15 }
 0x498   :  { %6495 = vmatpush3.msra.mxu1 %v2927_v7  ;;  %6496 = vmatprep.mubr.msk.f32.mxu1 %vm6964_vm1, %v8143_v39  ;;  %v3339_v7 = vpop.permute.xlu0 %3338 }
 0x499   :  { %4594 = vrot.lane.b32.xlu1 %v7174_v52, %s6969_s16  ;;  %6504 = vmatprep.subr.mxu1 %v8143_v39 }
 0x49a   :  { %v7654_v44 = vpop.eup %6735 }
 0x49b   :  { %6492 = vmatmul.mubr.msk.f32.vlgmr.msra.gmra.mrb[40].mxu0 %vm1155_vm3, %v7654_v44 }
 0x49c   :  { %6500 = vmatpush3.msra.mxu0 %v7563_v29  ;;  %6501 = vmatprep.mubr.msk.f32.mxu0 %vm6964_vm1, %v8143_v39 }
 0x49d   :  { %4752 = vrot.lane.b32.xlu1 %v7214_v5, %s6969_s16  ;;  %6509 = vmatprep.subr.mxu0 %v8143_v39 }
 0x4b8   :  { %v2485_v59 = vpop.xlane.xlu1 %2484 }
 0x4b9   :  { %v2497_v52 = vsub.f32 %v7555_v57, %v2485_v59 }
 0x4bb   :  { %v2510_v60 = vmul.f32 1.442695, %v2497_v52 }
 0x4bd   :  { %6737 = vpow2.f32 %v2510_v60 }
 0x4c0   :  { %v2488_v53 = vpop.xlane.xlu0 %2487 }
 0x4c1   :  { %v2498_v58 = vsub.f32 %v7559_v22, %v2488_v53 }
 0x4c3   :  { %v2512_v33 = vmul.f32 1.442695, %v2498_v58 }
 0x4c4   :  { %v3337_v29 = vpop.permute.xlu0 %3336 }
 0x4c5   :  { %6739 = vpow2.f32 %v2512_v33 }
 0x4c7   :  { %v7666_v25 = vpop.eup %6737 }
 0x4c8   :  { %v3495_v34 = vpop.permute.xlu0 %3494  ;;  %6497 = vmatmul.mubr.msk.f32.vlgmr.msra.gmra.mrb[40].mxu1 %vm1155_vm3, %v7666_v25 }
 0x4c9   :  { %6505 = vmatpush3.msra.mxu1 %v3081_v24  ;;  %6506 = vmatprep.mubr.msk.f32.mxu1 %vm6964_vm1, %v8143_v39  ;;  %v3415_v24 = vpop.permute.xlu1 %3414 }
 0x4ca   :  { %6514 = vmatprep.subr.mxu1 %v8143_v39 }
 0x4cc   :  { %v3493_v5 = vpop.permute.xlu0 %3492 }
 0x4cf   :  { %v7673_v57 = vpop.eup %6739 }
 0x4d0   :  { %6502 = vmatmul.mubr.msk.f32.vlgmr.msra.gmra.mrb[42].mxu0 %vm1155_vm3, %v7673_v57  ;;  %v3651_v22 = vpop.permute.xlu0 %3650 }
 0x4d1   :  { %6510 = vmatpush3.xpose.msk.msra.mxu0 %vm538_vm2, %v7567_v32  ;;  %6511 = vmatprep.mubr.msk.f32.mxu0 %vm6964_vm1, %v8143_v39 }
 0x4d2   :  { %6519 = vmatprep.subr.mxu0 %v8143_v39 }
 0x4d4   :  { %6512 = vmatmul.mubr.msk.f32.vlgmr.msra.gmra.mrb[44].mxu0 %vm538_vm2, %v7569_v4  ;;  %v3649_v32 = vpop.permute.xlu0 %3648 }
 0x4d5   :  { %6520 = vmatpush3.xpose.msk.msra.mxu0 %vm538_vm2, %v3339_v7  ;;  %6521 = vmatprep.mubr.msk.f32.mxu0 %vm6964_vm1, %v8143_v39 }
 0x4d6   :  { %6529 = vmatprep.subr.mxu0 %v8143_v39 }
 0x4d8   :  { %6522 = vmatmul.mubr.msk.f32.vlgmr.msra.gmra.mrb[46].mxu0 %vm538_vm2, %v3337_v29  ;;  %v3885_v4 = vpop.permute.xlu0 %3884 }
 0x4d9   :  { %6530 = vmatpush3.xpose.msk.msra.mxu0 %vm538_vm2, %v3495_v34  ;;  %6531 = vmatprep.mubr.msk.f32.mxu0 %vm6964_vm1, %v8143_v39 }
 0x4da   :  { %6539 = vmatprep.subr.mxu0 %v8143_v39 }
 0x4dc   :  { %6532 = vmatmul.mubr.msk.f32.vlgmr.msra.gmra.mrb[48].mxu0 %vm538_vm2, %v3493_v5 }
 0x4dd   :  { %6540 = vmatpush3.xpose.msk.msra.mxu0 %vm538_vm2, %v3651_v22  ;;  %6541 = vmatprep.mubr.msk.f32.mxu0 %vm6964_vm1, %v8143_v39 }
 0x4de   :  { %6549 = vmatprep.subr.mxu0 %v8143_v39 }
 0x4e0   :  { %6542 = vmatmul.mubr.msk.f32.vlgmr.msra.gmra.mrb[50].mxu0 %vm538_vm2, %v3649_v32 }
 0x4e1   :  { %6550 = vmatpush3.msra.mxu0 %v3885_v4  ;;  %6551 = vmatprep.mubr.msk.f32.mxu0 %vm6964_vm1, %v8143_v39 }
 0x4e2   :  { %6559 = vmatprep.subr.mxu0 %v8143_v39 }
 0x4ed   :  { %v2491_v41 = vpop.xlane.xlu1 %2490 }
 0x4ee   :  { %v2499_v45 = vsub.f32 %v7585_v56, %v2491_v41 }
 0x4f0   :  { %v2514_v46 = vmul.f32 1.442695, %v2499_v45 }
 0x4f1   :  { %v3573_v2 = vpop.permute.xlu1 %3572 }
 0x4f2   :  { %6741 = vpow2.f32 %v2514_v46 }
 0x4f5   :  { %v3571_v59 = vpop.permute.xlu1 %3570 }
 0x4f9   :  { %v3729_v60 = vpop.permute.xlu1 %3728 }
 0x4fc   :  { %v7703_v52 = vpop.eup %6741 }
 0x4fd   :  { %6507 = vmatmul.mubr.msk.f32.vlgmr.msra.gmra.mrb[42].mxu1 %vm1155_vm3, %v7703_v52  ;;  %v3727_v56 = vpop.permute.xlu1 %3726 }
 0x4fe   :  { %6515 = vmatpush3.xpose.msk.msra.mxu1 %vm538_vm2, %v7615_v27  ;;  %6516 = vmatprep.mubr.msk.f32.mxu1 %vm6964_vm1, %v8143_v39 }
 0x4ff   :  { %6524 = vmatprep.subr.mxu1 %v8143_v39 }
 0x501   :  { %6517 = vmatmul.mubr.msk.f32.vlgmr.msra.gmra.mrb[44].mxu1 %vm538_vm2, %v7621_v50  ;;  %v3961_v27 = vpop.permute.xlu1 %3960 }
 0x502   :  { %6525 = vmatpush3.xpose.msk.msra.mxu1 %vm538_vm2, %v3417_v47  ;;  %6526 = vmatprep.mubr.msk.f32.mxu1 %vm6964_vm1, %v8143_v39 }
 0x503   :  { %6534 = vmatprep.subr.mxu1 %v8143_v39 }
 0x505   :  { %6527 = vmatmul.mubr.msk.f32.vlgmr.msra.gmra.mrb[46].mxu1 %vm538_vm2, %v3415_v24 }
 0x506   :  { %6535 = vmatpush3.xpose.msk.msra.mxu1 %vm538_vm2, %v3573_v2  ;;  %6536 = vmatprep.mubr.msk.f32.mxu1 %vm6964_vm1, %v8143_v39 }
 0x507   :  { %6544 = vmatprep.subr.mxu1 %v8143_v39 }
 0x509   :  { %6537 = vmatmul.mubr.msk.f32.vlgmr.msra.gmra.mrb[48].mxu1 %vm538_vm2, %v3571_v59 }
 0x50a   :  { %6545 = vmatpush3.xpose.msk.msra.mxu1 %vm538_vm2, %v3729_v60  ;;  %6546 = vmatprep.mubr.msk.f32.mxu1 %vm6964_vm1, %v8143_v39 }
 0x50b   :  { %6554 = vmatprep.subr.mxu1 %v8143_v39 }
 0x50d   :  { %6547 = vmatmul.mubr.msk.f32.vlgmr.msra.gmra.mrb[50].mxu1 %vm538_vm2, %v3727_v56 }
 0x50e   :  { %6555 = vmatpush3.msra.mxu1 %v3961_v27  ;;  %6556 = vmatprep.mubr.msk.f32.mxu1 %vm6964_vm1, %v8143_v39 }
 0x50f   :  { %6564 = vmatprep.subr.mxu1 %v8143_v39 }
 0x52d   :  { %v7732_v50 = vpop.f32.mrb[36].mxu0 }
 0x52e   :  { %v6473_v47 = vpop.f32.mrb[37].mxu0 }
 0x531   :  { %v7734_v7 = vpop.f32.mrb[38].mxu0 }
 0x532   :  { %v6483_v53 = vpop.f32.mrb[39].mxu0 }
 0x566   :  { %v7736_v58 = vpop.f32.mrb[36].mxu1 }
 0x567   :  { %v6478_v33 = vpop.f32.mrb[37].mxu1 }
 0x56a   :  { %v7738_v29 = vpop.f32.mrb[38].mxu1 }
 0x56b   :  { %v6488_v34 = vpop.f32.mrb[39].mxu1 }
 0x56e   :  { %v7740_v5 = vpop.f32.mrb[40].mxu0 }
 0x56f   :  { %v6493_v22 = vpop.f32.mrb[41].mxu0 }
 0x59b   :  { %v7742_v32 = vpop.f32.mrb[40].mxu1 }
 0x59c   :  { %v6498_v4 = vpop.f32.mrb[41].mxu1 }
 0x5a3   :  { %v7744_v24 = vpop.f32.mrb[42].mxu0 }
 0x5a4   :  { %8146 = vst [vmem:[#allocation17_spill] sm:$0xff] %v7744_v24  ;;  %v6503_v41 = vpop.f32.mrb[43].mxu0 }
 0x5a7   :  { %v3254_v45 = vpop.f32.mrb[44].mxu0 }
 0x5a8   :  { %v7746_v46 = vmul.f32 0.25, %v3254_v45  ;;  %v6513_v2 = vpop.f32.mrb[45].mxu0 }
 0x5aa   :  { %v3812_v59 = vsel %vm1155_vm3, %v7746_v46, -inf }
 0x5ab   :  { %3813 = vmax.xlane.f32.xlu0 %v3812_v59  ;;  %v3410_v60 = vpop.f32.mrb[46].mxu0 }
 0x5ac   :  { %v7750_v56 = vmul.f32 0.25, %v3410_v60  ;;  %v6523_v27 = vpop.f32.mrb[47].mxu0 }
 0x5ae   :  { %v3818_v47 = vsel %vm1155_vm3, %v7750_v56, -inf }
 0x5af   :  { %3819 = vmax.xlane.f32.xlu0 %v3818_v47  ;;  %v3566_v53 = vpop.f32.mrb[48].mxu0 }
 0x5b0   :  { %v6533_v33 = vpop.f32.mrb[49].mxu0  ;;  %v7762_v47 = vmul.f32 0.25, %v3566_v53 }
 0x5b3   :  { %v3722_v34 = vpop.f32.mrb[50].mxu0 }
 0x5b4   :  { %v6543_v22 = vpop.f32.mrb[51].mxu0 }
 0x5d0   :  { %v7754_v4 = vpop.f32.mrb[42].mxu1 }
 0x5d1   :  { %8147 = vst [vmem:[#allocation18_spill] sm:$0xff] %v7754_v4  ;;  %v6508_v41 = vpop.f32.mrb[43].mxu1  ;;  %v7768_v4 = vmul.f32 0.25, %v3722_v34 }
 0x5d4   :  { %v3332_v45 = vpop.f32.mrb[44].mxu1 }
 0x5d5   :  { %v7756_v2 = vmul.f32 0.25, %v3332_v45  ;;  %v6518_v39 = vpop.f32.mrb[45].mxu1 }
 0x5d6   :  { %v3824_v39 = vsel %vm1155_vm3, %v7762_v47, -inf }
 0x5d7   :  { %v3815_v59 = vsel %vm1155_vm3, %v7756_v2, -inf }
 0x5d8   :  { %3816 = vmax.xlane.f32.xlu1 %v3815_v59  ;;  %v3488_v60 = vpop.f32.mrb[46].mxu1 }
 0x5d9   :  { %v7760_v27 = vmul.f32 0.25, %v3488_v60  ;;  %v6528_v28 = vpop.f32.mrb[47].mxu1  ;;  %v3830_v60 = vsel %vm1155_vm3, %v7768_v4, -inf }
 0x5db   :  { %v3821_v33 = vsel %vm1155_vm3, %v7760_v27, -inf }
 0x5dc   :  { %3822 = vmax.xlane.f32.xlu0 %v3821_v33  ;;  %v3644_v22 = vpop.f32.mrb[48].mxu1  ;;  %v4037_v33 = vpop.permute.xlu1 %4036 }
 0x5dd   :  { %v7766_v41 = vmul.f32 0.25, %v3644_v22  ;;  %v6538_v45 = vpop.f32.mrb[49].mxu1 }
 0x5df   :  { %v3827_v59 = vsel %vm1155_vm3, %v7766_v41, -inf }
 0x5e0   :  { %3825 = vmax.xlane.f32.xlu0 %v3824_v39  ;;  %3828 = vmax.xlane.f32.xlu1 %v3827_v59  ;;  %v3800_v28 = vpop.f32.mrb[50].mxu1 }
 0x5e1   :  { %v6548_v53 = vpop.f32.mrb[51].mxu1 }
 0x5e4   :  { %3831 = vmax.xlane.f32.xlu0 %v3830_v60 }
 0x5f1   :  { %4750 = vrot.lane.b32.xlu1 %v7233_v10, %s6969_s16  ;;  %v7790_v10 = vmul.f32 0.25, %v3800_v28 }
 0x5fa   :  { %4672 = vrot.lane.b32.xlu0 %v7198_v0, %s6969_s16  ;;  %v4189_v0 = vpop.permute.xlu0 %4188 }
 0x5fe   :  { %4830 = vrot.lane.b32.xlu0 %v7195_v62, %s6969_s16  ;;  %v3833_v62 = vsel %vm1155_vm3, %v7790_v10, -inf }
 0x602   :  { %4828 = vrot.lane.b32.xlu0 %v7203_v1, %s6969_s16  ;;  %v7796_v1 = vpop.permute.xlu0 %4340 }
 0x606   :  { %4986 = vrot.lane.b32.xlu0 %v7216_v6, %s6969_s16  ;;  %v7800_v6 = vpop.permute.xlu0 %4518 }
 0x60a   :  { %4984 = vrot.lane.b32.xlu0 %v7230_v9, %s6969_s16  ;;  %v7804_v9 = vpop.permute.xlu0 %4516 }
 0x60e   :  { %5220 = vrot.lane.b32.xlu0 %v7282_v18, %s6970_s20  ;;  %v7810_v18 = vpop.permute.xlu0 %4674 }
 0x612   :  { %5524 = vrot.lane.b32.xlu0 %v7339_v61, %s6970_s20 }
 0x615   :  { %3834 = vmax.xlane.f32.xlu1 %v3833_v62 }
 0x626   :  { %4908 = vrot.lane.b32.xlu1 %v7223_v8, %s6969_s16 }
 0x62a   :  { %4906 = vrot.lane.b32.xlu1 %v7242_v12, %s6969_s16 }
 0x62e   :  { %5064 = vrot.lane.b32.xlu1 %v7246_v13, %s6969_s16 }
 0x632   :  { %5062 = vrot.lane.b32.xlu1 %v7258_v14, %s6969_s16 }
 0x636   :  { %5296 = vrot.lane.b32.xlu1 %v7272_v16, %s6970_s20  ;;  %v4113_v16 = vpop.permute.xlu1 %4112 }
 0x638   :  { %v3814_v61 = vpop.xlane.xlu0 %3813 }
 0x639   :  { %v3836_v8 = vsub.f32 %v7746_v46, %v3814_v61  ;;  %v8148_v46 = vmov 0.0  }
 0x63a   :  { %5372 = vrot.lane.b32.xlu1 %v7382_v37, %s6970_s20  ;;  %v4265_v37 = vpop.permute.xlu1 %4264 }
 0x63b   :  { %v3844_v12 = vmul.f32 1.442695, %v3836_v8 }
 0x63c   :  { %v3820_v34 = vpop.xlane.xlu0 %3819 }
 0x63d   :  { %6743 = vpow2.f32 %v3844_v12  ;;  %v3838_v13 = vsub.f32 %v7750_v56, %v3820_v34 }
 0x63e   :  { %5448 = vrot.lane.b32.xlu1 %v7390_v36, %s6970_s20  ;;  %v4417_v36 = vpop.permute.xlu1 %4416 }
 0x63f   :  { %v3848_v14 = vmul.f32 1.442695, %v3838_v13 }
 0x641   :  { %6745 = vpow2.f32 %v3848_v14 }
 0x642   :  { %5600 = vrot.lane.b32.xlu1 %v7404_v19, %s6970_s20  ;;  %v7836_v19 = vpop.permute.xlu1 %4596 }
 0x646   :  { %v7838_v45 = vpop.permute.xlu1 %4594 }
 0x647   :  { %v7822_v22 = vpop.eup %6743 }
 0x648   :  { %6552 = vmatmul.mubr.msk.f32.vlgmr.msra.gmra.mrb[52].mxu0 %vm1155_vm3, %v7822_v22 }
 0x649   :  { %6560 = vmatpush3.msra.mxu0 %v4037_v33  ;;  %6561 = vmatprep.mubr.msk.f32.mxu0 %vm6964_vm1, %v8148_v46 }
 0x64a   :  { %6569 = vmatprep.subr.mxu0 %v8148_v46  ;;  %v7840_v39 = vpop.permute.xlu1 %4752 }
 0x64b   :  { %v7829_v56 = vpop.eup %6745 }
 0x64c   :  { %6562 = vmatmul.mubr.msk.f32.vlgmr.msra.gmra.mrb[54].mxu0 %vm1155_vm3, %v7829_v56 }
 0x64d   :  { %6570 = vmatpush3.msra.mxu0 %v4189_v0  ;;  %6571 = vmatprep.mubr.msk.f32.mxu0 %vm6964_vm1, %v8148_v46 }
 0x64e   :  { %6579 = vmatprep.subr.mxu0 %v8148_v46 }
 0x665   :  { %v3817_v59 = vpop.xlane.xlu1 %3816 }
 0x666   :  { %v3837_v28 = vsub.f32 %v7756_v2, %v3817_v59 }
 0x668   :  { %v3846_v53 = vmul.f32 1.442695, %v3837_v28 }
 0x669   :  { %v3823_v60 = vpop.xlane.xlu0 %3822 }
 0x66a   :  { %6747 = vpow2.f32 %v3846_v53  ;;  %v3839_v62 = vsub.f32 %v7760_v27, %v3823_v60 }
 0x66c   :  { %v3850_v0 = vmul.f32 1.442695, %v3839_v62 }
 0x66d   :  { %v3826_v61 = vpop.xlane.xlu0 %3825  ;;  %v3829_v8 = vpop.xlane.xlu1 %3828 }
 0x66e   :  { %6749 = vpow2.f32 %v3850_v0  ;;  %v3840_v12 = vsub.f32 %v7762_v47, %v3826_v61  ;;  %v3841_v34 = vsub.f32 %v7766_v41, %v3829_v8 }
 0x670   :  { %v3852_v33 = vmul.f32 1.442695, %v3840_v12  ;;  %v3854_v13 = vmul.f32 1.442695, %v3841_v34 }
 0x671   :  { %v3832_v14 = vpop.xlane.xlu0 %3831 }
 0x672   :  { %6751 = vpow2.f32 %v3852_v33  ;;  %v3842_v24 = vsub.f32 %v7768_v4, %v3832_v14 }
 0x673   :  { %6753 = vpow2.f32 %v3854_v13 }
 0x674   :  { %v7847_v2 = vpop.eup %6747  ;;  %v3856_v59 = vmul.f32 1.442695, %v3842_v24 }
 0x675   :  { %6557 = vmatmul.mubr.msk.f32.vlgmr.msra.gmra.mrb[52].mxu1 %vm1155_vm3, %v7847_v2  ;;  %v4673_v27 = vpop.permute.xlu0 %4672 }
 0x676   :  { %6755 = vpow2.f32 %v3856_v59  ;;  %6565 = vmatpush3.msra.mxu1 %v4113_v16  ;;  %6566 = vmatprep.mubr.msk.f32.mxu1 %vm6964_vm1, %v8148_v46 }
 0x677   :  { %6574 = vmatprep.subr.mxu1 %v8148_v46 }
 0x678   :  { %v7854_v47 = vpop.eup %6749 }
 0x679   :  { %6567 = vmatmul.mubr.msk.f32.vlgmr.msra.gmra.mrb[54].mxu1 %vm1155_vm3, %v7854_v47  ;;  %v4831_v4 = vpop.permute.xlu0 %4830 }
 0x67a   :  { %6575 = vmatpush3.msra.mxu1 %v4265_v37  ;;  %6576 = vmatprep.mubr.msk.f32.mxu1 %vm6964_vm1, %v8148_v46 }
 0x67b   :  { %6584 = vmatprep.subr.mxu1 %v8148_v46 }
 0x67c   :  { %v7861_v24 = vpop.eup %6751 }
 0x67d   :  { %v7863_v41 = vpop.eup %6753  ;;  %6572 = vmatmul.mubr.msk.f32.vlgmr.msra.gmra.mrb[56].mxu0 %vm1155_vm3, %v7861_v24 }
 0x67e   :  { %6580 = vmatpush3.msra.mxu0 %v7796_v1  ;;  %6577 = vmatmul.mubr.msk.f32.vlgmr.msra.gmra.mrb[56].mxu1 %vm1155_vm3, %v7863_v41  ;;  %v4829_v1 = vpop.permute.xlu0 %4828 }
 0x67f   :  { %6585 = vmatpush3.msra.mxu1 %v4417_v36  ;;  %6581 = vmatprep.mubr.msk.f32.mxu0 %vm6964_vm1, %v8148_v46 }
 0x680   :  { %v7872_v16 = vpop.eup %6755  ;;  %6589 = vmatprep.subr.mxu0 %v8148_v46  ;;  %6586 = vmatprep.mubr.msk.f32.mxu1 %vm6964_vm1, %v8148_v46 }
 0x681   :  { %6582 = vmatmul.mubr.msk.f32.vlgmr.msra.gmra.mrb[58].mxu0 %vm1155_vm3, %v7872_v16  ;;  %6594 = vmatprep.subr.mxu1 %v8148_v46 }
 0x682   :  { %6591 = vmatprep.mubr.msk.f32.mxu0 %vm6964_vm1, %v8148_v46  ;;  %v4987_v37 = vpop.permute.xlu0 %4986 }
 0x685   :  { %6590 = vmatpush3.xpose.msk.msra.mxu0 %vm538_vm2, %v7800_v6 }
 0x686   :  { %6599 = vmatprep.subr.mxu0 %v8148_v46  ;;  %v4985_v6 = vpop.permute.xlu0 %4984 }
 0x688   :  { %6592 = vmatmul.mubr.msk.f32.vlgmr.msra.gmra.mrb[60].mxu0 %vm538_vm2, %v7804_v9 }
 0x689   :  { %6600 = vmatpush3.xpose.msk.msra.mxu0 %vm538_vm2, %v7810_v18  ;;  %6601 = vmatprep.mubr.msk.f32.mxu0 %vm6964_vm1, %v8148_v46  ;;  %v4751_v18 = vpop.permute.xlu1 %4750 }
 0x68a   :  { %6609 = vmatprep.subr.mxu0 %v8148_v46  ;;  %v5221_v9 = vpop.permute.xlu0 %5220 }
 0x68c   :  { %6602 = vmatmul.mubr.msk.f32.vlgmr.msra.gmra.mrb[62].mxu0 %vm538_vm2, %v4673_v27 }
 0x68d   :  { %6610 = vmatpush3.xpose.msk.msra.mxu0 %vm538_vm2, %v4831_v4  ;;  %6611 = vmatprep.mubr.msk.f32.mxu0 %vm6964_vm1, %v8148_v46 }
 0x68e   :  { %6619 = vmatprep.subr.mxu0 %v8148_v46 }
 0x690   :  { %6612 = vmatmul.mubr.msk.f32.vlgmr.msra.gmra.mrb[64].mxu0 %vm538_vm2, %v4829_v1 }
 0x691   :  { %6620 = vmatpush3.xpose.msk.msra.mxu0 %vm538_vm2, %v4987_v37  ;;  %6621 = vmatprep.mubr.msk.f32.mxu0 %vm6964_vm1, %v8148_v46 }
 0x692   :  { %6629 = vmatprep.subr.mxu0 %v8148_v46 }
 0x694   :  { %6622 = vmatmul.mubr.msk.f32.vlgmr.msra.gmra.mrb[66].mxu0 %vm538_vm2, %v4985_v6 }
 0x695   :  { %6630 = vmatpush3.msra.mxu0 %v5221_v9  ;;  %6631 = vmatprep.mubr.msk.f32.mxu0 %vm6964_vm1, %v8148_v46 }
 0x696   :  { %6639 = vmatprep.subr.mxu0 %v8148_v46 }
 0x6a2   :  { %v3835_v36 = vpop.xlane.xlu1 %3834 }
 0x6a3   :  { %v3843_v28 = vsub.f32 %v7790_v10, %v3835_v36 }
 0x6a5   :  { %v3858_v53 = vmul.f32 1.442695, %v3843_v28 }
 0x6a6   :  { %v4909_v60 = vpop.permute.xlu1 %4908 }
 0x6a7   :  { %6757 = vpow2.f32 %v3858_v53 }
 0x6aa   :  { %v4907_v62 = vpop.permute.xlu1 %4906 }
 0x6ae   :  { %v5065_v61 = vpop.permute.xlu1 %5064 }
 0x6b1   :  { %v7907_v0 = vpop.eup %6757 }
 0x6b2   :  { %6587 = vmatmul.mubr.msk.f32.vlgmr.msra.gmra.mrb[58].mxu1 %vm1155_vm3, %v7907_v0  ;;  %v5063_v10 = vpop.permute.xlu1 %5062 }
 0x6b3   :  { %6595 = vmatpush3.xpose.msk.msra.mxu1 %vm538_vm2, %v7836_v19  ;;  %6596 = vmatprep.mubr.msk.f32.mxu1 %vm6964_vm1, %v8148_v46 }
 0x6b4   :  { %6604 = vmatprep.subr.mxu1 %v8148_v46 }
 0x6b6   :  { %6597 = vmatmul.mubr.msk.f32.vlgmr.msra.gmra.mrb[60].mxu1 %vm538_vm2, %v7838_v45  ;;  %v5297_v19 = vpop.permute.xlu1 %5296 }
 0x6b7   :  { %6605 = vmatpush3.xpose.msk.msra.mxu1 %vm538_vm2, %v7840_v39  ;;  %6606 = vmatprep.mubr.msk.f32.mxu1 %vm6964_vm1, %v8148_v46 }
 0x6b8   :  { %6614 = vmatprep.subr.mxu1 %v8148_v46 }
 0x6ba   :  { %6607 = vmatmul.mubr.msk.f32.vlgmr.msra.gmra.mrb[62].mxu1 %vm538_vm2, %v4751_v18 }
 0x6bb   :  { %6615 = vmatpush3.xpose.msk.msra.mxu1 %vm538_vm2, %v4909_v60  ;;  %6616 = vmatprep.mubr.msk.f32.mxu1 %vm6964_vm1, %v8148_v46 }
 0x6bc   :  { %6624 = vmatprep.subr.mxu1 %v8148_v46 }
 0x6be   :  { %6617 = vmatmul.mubr.msk.f32.vlgmr.msra.gmra.mrb[64].mxu1 %vm538_vm2, %v4907_v62 }
 0x6bf   :  { %6625 = vmatpush3.xpose.msk.msra.mxu1 %vm538_vm2, %v5065_v61  ;;  %6626 = vmatprep.mubr.msk.f32.mxu1 %vm6964_vm1, %v8148_v46 }
 0x6c0   :  { %6634 = vmatprep.subr.mxu1 %v8148_v46 }
 0x6c2   :  { %6627 = vmatmul.mubr.msk.f32.vlgmr.msra.gmra.mrb[66].mxu1 %vm538_vm2, %v5063_v10 }
 0x6c3   :  { %6635 = vmatpush3.msra.mxu1 %v5297_v19  ;;  %6636 = vmatprep.mubr.msk.f32.mxu1 %vm6964_vm1, %v8148_v46 }
 0x6c4   :  { %6644 = vmatprep.subr.mxu1 %v8148_v46 }
 0x71b   :  { %v7937_v45 = vpop.f32.mrb[52].mxu0 }
 0x71c   :  { %v6553_v39 = vpop.f32.mrb[53].mxu0 }
 0x71f   :  { %v7939_v8 = vpop.f32.mrb[54].mxu0 }
 0x720   :  { %v6563_v12 = vpop.f32.mrb[55].mxu0 }
 0x748   :  { %v7941_v34 = vpop.f32.mrb[52].mxu1 }
 0x749   :  { %v6558_v33 = vpop.f32.mrb[53].mxu1 }
 0x74c   :  { %v7943_v13 = vpop.f32.mrb[54].mxu1 }
 0x74d   :  { %v6568_v14 = vpop.f32.mrb[55].mxu1 }
 0x750   :  { %v7945_v59 = vpop.f32.mrb[56].mxu0 }
 0x751   :  { %v7947_v27 = vpop.f32.mrb[56].mxu1  ;;  %v6573_v4 = vpop.f32.mrb[57].mxu0 }
 0x752   :  { %v6578_v1 = vpop.f32.mrb[57].mxu1 }
 0x754   :  { %v7949_v37 = vpop.f32.mrb[58].mxu0 }
 0x755   :  { %v6583_v6 = vpop.f32.mrb[59].mxu0 }
 0x75b   :  { %v4590_v9 = vpop.f32.mrb[60].mxu0 }
 0x75c   :  { %v7951_v18 = vmul.f32 0.25, %v4590_v9  ;;  %v6593_v36 = vpop.f32.mrb[61].mxu0 }
 0x75e   :  { %v5148_v28 = vsel %vm1155_vm3, %v7951_v18, -inf }
 0x75f   :  { %5149 = vmax.xlane.f32.xlu0 %v5148_v28  ;;  %v4746_v53 = vpop.f32.mrb[62].mxu0 }
 0x760   :  { %v7955_v60 = vmul.f32 0.25, %v4746_v53  ;;  %v6603_v62 = vpop.f32.mrb[63].mxu0 }
 0x762   :  { %v5154_v61 = vsel %vm1155_vm3, %v7955_v60, -inf }
 0x763   :  { %5155 = vmax.xlane.f32.xlu0 %v5154_v61  ;;  %v4902_v10 = vpop.f32.mrb[64].mxu0 }
 0x764   :  { %v6613_v19 = vpop.f32.mrb[65].mxu0  ;;  %v7967_v62 = vmul.f32 0.25, %v4902_v10 }
 0x767   :  { %v5058_v39 = vpop.f32.mrb[66].mxu0 }
 0x768   :  { %v6623_v12 = vpop.f32.mrb[67].mxu0 }
 0x785   :  { %v7959_v33 = vpop.f32.mrb[58].mxu1 }
 0x786   :  { %v6588_v14 = vpop.f32.mrb[59].mxu1 }
 0x789   :  { %v4668_v4 = vpop.f32.mrb[60].mxu1 }
 0x78a   :  { %v7961_v1 = vmul.f32 0.25, %v4668_v4  ;;  %v6598_v6 = vpop.f32.mrb[61].mxu1  ;;  %v7973_v4 = vmul.f32 0.25, %v5058_v39  ;;  %v6971_v39 = vmov 0  }
 0x78b   :  { %v5160_v6 = vsel %vm1155_vm3, %v7967_v62, -inf  ;;  %6709 = vset.pattern.permute.xlu0 %v6971_v39  ;;  %6710 = vset.pattern.permute.xlu1 %v6971_v39 }
 0x78c   :  { %v5151_v9 = vsel %vm1155_vm3, %v7961_v1, -inf }
 0x78d   :  { %5152 = vmax.xlane.f32.xlu1 %v5151_v9  ;;  %v4824_v36 = vpop.f32.mrb[62].mxu1 }
 0x78e   :  { %v7965_v28 = vmul.f32 0.25, %v4824_v36  ;;  %v6608_v53 = vpop.f32.mrb[63].mxu1 }
 0x790   :  { %v5157_v61 = vsel %vm1155_vm3, %v7965_v28, -inf }
 0x791   :  { %5158 = vmax.xlane.f32.xlu0 %v5157_v61  ;;  %v4980_v19 = vpop.f32.mrb[64].mxu1  ;;  %v5166_v61 = vsel %vm1155_vm3, %v7973_v4, -inf }
 0x792   :  { %v7971_v12 = vmul.f32 0.25, %v4980_v19  ;;  %v6618_v14 = vpop.f32.mrb[65].mxu1 }
 0x793   :  { %v1204_v14 = vsel %vm1155_vm3, %v7386_v38, 0.0  ;;  %v1210_v38 = vsel %vm1155_vm3, %v7414_v35, 0.0  ;;  %v1216_v35 = vsel %vm1155_vm3, %v7428_v21, 0.0  ;;  %v2531_v21 = vsel %vm1155_vm3, %v7666_v25, 0.0 }
 0x794   :  { %v5163_v9 = vsel %vm1155_vm3, %v7971_v12, -inf  ;;  %v1225_v25 = vsel %vm1155_vm3, %v7491_v31, 0.0  ;;  %v3878_v31 = vsel %vm1155_vm3, %v7872_v16, 0.0 }
 0x795   :  { %5161 = vmax.xlane.f32.xlu0 %v5160_v6  ;;  %5164 = vmax.xlane.f32.xlu1 %v5163_v9  ;;  %v5136_v10 = vpop.f32.mrb[66].mxu1  ;;  %v1207_v6 = vsel %vm1155_vm3, %v7400_v20, 0.0  ;;  %v2516_v9 = vsel %vm1155_vm3, %v7579_v51, 0.0  ;;  %v3863_v20 = vsel %vm1155_vm3, %v7847_v2, 0.0  ;;  %v1213_v51 = vsel %vm1155_vm3, %v7447_v17, 0.0  ;;  %v5525_v17 = vpop.permute.xlu0 %5524 }
 0x796   :  { %v7979_v36 = vmul.f32 0.25, %v5136_v10  ;;  %v6628_v53 = vpop.f32.mrb[67].mxu1  ;;  %v2525_v10 = vsel %vm1155_vm3, %v7645_v15, 0.0  ;;  %v1219_v15 = vsel %vm1155_vm3, %v7458_v54, 0.0  ;;  %v3869_v2 = vsel %vm1155_vm3, %v7854_v47, 0.0 }
 0x797   :  { %v2537_v47 = vsel %vm1155_vm3, %v7703_v52, 0.0 }
 0x798   :  { %v5169_v19 = vsel %vm1155_vm3, %v7979_v36, -inf }
 0x799   :  { %5167 = vmax.xlane.f32.xlu0 %v5166_v61  ;;  %5170 = vmax.xlane.f32.xlu1 %v5169_v19 }
 0x7aa   :  { %5752 = vrot.lane.b32.xlu1 %v7418_v40, %s6970_s20  ;;  %v2522_v40 = vsel %vm1155_vm3, %v7590_v55, 0.0  ;;  %v2528_v55 = vsel %vm1155_vm3, %v7654_v44, 0.0  ;;  %v3866_v44 = vsel %vm1155_vm3, %v7829_v56, 0.0 }
 0x7af   :  { %5676 = vrot.lane.b32.xlu0 %v7344_v63, %s6970_s20  ;;  %v2519_v63 = vsel %vm1155_vm3, %v7636_v49, 0.0  ;;  %v3860_v49 = vsel %vm1155_vm3, %v7822_v22, 0.0  ;;  %v2534_v22 = vsel %vm1155_vm3, %v7673_v57, 0.0  ;;  %v1222_v57 = vsel %vm1155_vm3, %v7445_v3, 0.0 }
 0x7b0   :  { %v3875_v3 = vsel %vm1155_vm3, %v7863_v41, 0.0 }
 0x7ce   :  { %1205 = vadd.xlane.f32.xlu0 %v1204_v14  ;;  %1208 = vadd.xlane.f32.xlu1 %v1207_v6  ;;  %v5373_v14 = vpop.permute.xlu1 %5372 }
 0x7d2   :  { %2517 = vadd.xlane.f32.xlu0 %v2516_v9  ;;  %2523 = vadd.xlane.f32.xlu1 %v2522_v40  ;;  %v5449_v6 = vpop.permute.xlu1 %5448 }
 0x7d6   :  { %2520 = vadd.xlane.f32.xlu0 %v2519_v63  ;;  %2526 = vadd.xlane.f32.xlu1 %v2525_v10  ;;  %v5601_v9 = vpop.permute.xlu1 %5600 }
 0x7da   :  { %1211 = vadd.xlane.f32.xlu0 %v1210_v38  ;;  %3864 = vadd.xlane.f32.xlu1 %v3863_v20 }
 0x7de   :  { %1214 = vadd.xlane.f32.xlu0 %v1213_v51  ;;  %2529 = vadd.xlane.f32.xlu1 %v2528_v55 }
 0x7e2   :  { %3861 = vadd.xlane.f32.xlu0 %v3860_v49  ;;  %1220 = vadd.xlane.f32.xlu1 %v1219_v15 }
 0x7e6   :  { %1217 = vadd.xlane.f32.xlu0 %v1216_v35  ;;  %3870 = vadd.xlane.f32.xlu1 %v3869_v2 }
 0x7ea   :  { %3867 = vadd.xlane.f32.xlu0 %v3866_v44  ;;  %2535 = vadd.xlane.f32.xlu1 %v2534_v22 }
 0x7ec   :  { %v5150_v54 = vpop.xlane.xlu0 %5149 }
 0x7ed   :  { %v5172_v53 = vsub.f32 %v7951_v18, %v5150_v54  ;;  %v3872_v18 = vsel %vm1155_vm3, %v7861_v24, 0.0 }
 0x7ee   :  { %2532 = vadd.xlane.f32.xlu0 %v2531_v21  ;;  %2538 = vadd.xlane.f32.xlu1 %v2537_v47 }
 0x7ef   :  { %v5180_v61 = vmul.f32 1.442695, %v5172_v53 }
 0x7f0   :  { %v5156_v19 = vpop.xlane.xlu0 %5155 }
 0x7f1   :  { %6759 = vpow2.f32 %v5180_v61  ;;  %v5174_v56 = vsub.f32 %v7955_v60, %v5156_v19  ;;  %v3881_v60 = vsel %vm1155_vm3, %v7907_v0, 0.0 }
 0x7f2   :  { %1223 = vadd.xlane.f32.xlu0 %v1222_v57 }
 0x7f3   :  { %v5184_v39 = vmul.f32 1.442695, %v5174_v56 }
 0x7f5   :  { %6761 = vpow2.f32 %v5184_v39 }
 0x7f6   :  { %3873 = vadd.xlane.f32.xlu0 %v3872_v18 }
 0x7fa   :  { %1226 = vadd.xlane.f32.xlu0 %v1225_v25 }
 0x7fb   :  { %v6760_v52 = vpop.eup %6759 }
 0x7fc   :  { %6632 = vmatmul.mubr.msk.f32.vlgmr.msra.gmra.mrb[68].mxu0 %vm1155_vm3, %v6760_v52  ;;  %v5196_v41 = vsel %vm1155_vm3, %v6760_v52, 0.0  ;;  %v6124_v52 = vld [vmem:[#allocation2] ss:$0 sm:$0xff] }
 0x7fd   :  { %6640 = vmatpush3.msra.mxu0 %v5373_v14  ;;  %6641 = vmatprep.mubr.msk.f32.mxu0 %vm6964_vm1, %v8148_v46 }
 0x7fe   :  { %6649 = vmatprep.subr.mxu0 %v8148_v46  ;;  %3876 = vadd.xlane.f32.xlu0 %v3875_v3 }
 0x7ff   :  { %v6762_v24 = vpop.eup %6761 }
 0x800   :  { %6642 = vmatmul.mubr.msk.f32.vlgmr.msra.gmra.mrb[70].mxu0 %vm1155_vm3, %v6762_v24 }
 0x801   :  { %6650 = vmatpush3.msra.mxu0 %v5525_v17  ;;  %6651 = vmatprep.mubr.msk.f32.mxu0 %vm6964_vm1, %v8148_v46 }
 0x802   :  { %3879 = vadd.xlane.f32.xlu0 %v3878_v31  ;;  %6659 = vmatprep.subr.mxu0 %v8148_v46 }
 0x806   :  { %3882 = vadd.xlane.f32.xlu0 %v3881_v60 }
 0x80a   :  { %5197 = vadd.xlane.f32.xlu0 %v5196_v41 }
 0x81a   :  { %v5153_v40 = vpop.xlane.xlu1 %5152 }
 0x81b   :  { %v5173_v63 = vsub.f32 %v7961_v1, %v5153_v40 }
 0x81d   :  { %v5182_v10 = vmul.f32 1.442695, %v5173_v63 }
 0x81e   :  { %v5159_v16 = vpop.xlane.xlu0 %5158 }
 0x81f   :  { %6763 = vpow2.f32 %v5182_v10  ;;  %v5175_v38 = vsub.f32 %v7965_v28, %v5159_v16 }
 0x821   :  { %v5186_v20 = vmul.f32 1.442695, %v5175_v38 }
 0x822   :  { %v5162_v51 = vpop.xlane.xlu0 %5161  ;;  %v5165_v55 = vpop.xlane.xlu1 %5164 }
 0x823   :  { %6765 = vpow2.f32 %v5186_v20  ;;  %v5176_v0 = vsub.f32 %v7967_v62, %v5162_v51  ;;  %v5177_v49 = vsub.f32 %v7971_v12, %v5165_v55  ;;  %v5202_v12 = vsel %vm1155_vm3, %v6762_v24, 0.0 }
 0x825   :  { %v5188_v15 = vmul.f32 1.442695, %v5176_v0  ;;  %v5190_v35 = vmul.f32 1.442695, %v5177_v49 }
 0x826   :  { %v5168_v2 = vpop.xlane.xlu0 %5167  ;;  %v5171_v17 = vpop.xlane.xlu1 %5170 }
 0x827   :  { %6767 = vpow2.f32 %v5188_v15  ;;  %v5178_v1 = vsub.f32 %v7973_v4, %v5168_v2  ;;  %v5179_v44 = vsub.f32 %v7979_v36, %v5171_v17 }
 0x828   :  { %6769 = vpow2.f32 %v5190_v35 }
 0x829   :  { %v6764_v22 = vpop.eup %6763  ;;  %v5192_v28 = vmul.f32 1.442695, %v5178_v1  ;;  %v5194_v54 = vmul.f32 1.442695, %v5179_v44 }
 0x82a   :  { %6637 = vmatmul.mubr.msk.f32.vlgmr.msra.gmra.mrb[68].mxu1 %vm1155_vm3, %v6764_v22  ;;  %v5199_v53 = vsel %vm1155_vm3, %v6764_v22, 0.0  ;;  %v5677_v21 = vpop.permute.xlu0 %5676  ;;  %v5753_v47 = vpop.permute.xlu1 %5752 }
 0x82b   :  { %6771 = vpow2.f32 %v5192_v28  ;;  %6645 = vmatpush3.msra.mxu1 %v5449_v6  ;;  %5200 = vadd.xlane.f32.xlu1 %v5199_v53 }
 0x82c   :  { %6773 = vpow2.f32 %v5194_v54  ;;  %6646 = vmatprep.mubr.msk.f32.mxu1 %vm6964_vm1, %v8148_v46  ;;  %6654 = vmatprep.subr.mxu1 %v8148_v46 }
 0x82d   :  { %v6766_v62 = vpop.eup %6765 }
 0x82e   :  { %6647 = vmatmul.mubr.msk.f32.vlgmr.msra.gmra.mrb[70].mxu1 %vm1155_vm3, %v6766_v62  ;;  %v5205_v61 = vsel %vm1155_vm3, %v6766_v62, 0.0 }
 0x82f   :  { %6655 = vmatpush3.msra.mxu1 %v5601_v9  ;;  %5203 = vadd.xlane.f32.xlu1 %v5202_v12 }
 0x830   :  { %6656 = vmatprep.mubr.msk.f32.mxu1 %vm6964_vm1, %v8148_v46  ;;  %6664 = vmatprep.subr.mxu1 %v8148_v46 }
 0x831   :  { %v6768_v4 = vpop.eup %6767 }
 0x832   :  { %v6770_v36 = vpop.eup %6769  ;;  %6652 = vmatmul.mubr.msk.f32.vlgmr.msra.gmra.mrb[72].mxu0 %vm1155_vm3, %v6768_v4  ;;  %v5208_v39 = vsel %vm1155_vm3, %v6768_v4, 0.0 }
 0x833   :  { %6657 = vmatmul.mubr.msk.f32.vlgmr.msra.gmra.mrb[72].mxu1 %vm1155_vm3, %v6770_v36  ;;  %6660 = vmatpush3.msra.mxu0 %v5677_v21  ;;  %v5211_v18 = vsel %vm1155_vm3, %v6770_v36, 0.0 }
 0x834   :  { %6665 = vmatpush3.msra.mxu1 %v5753_v47  ;;  %5206 = vadd.xlane.f32.xlu1 %v5205_v61 }
 0x835   :  { %v6772_v19 = vpop.eup %6771  ;;  %6661 = vmatprep.mubr.msk.f32.mxu0 %vm6964_vm1, %v8148_v46  ;;  %6666 = vmatprep.mubr.msk.f32.mxu1 %vm6964_vm1, %v8148_v46 }
 0x836   :  { %v6774_v56 = vpop.eup %6773  ;;  %6662 = vmatmul.mubr.msk.f32.vlgmr.msra.gmra.mrb[74].mxu0 %vm1155_vm3, %v6772_v19  ;;  %v5214_v57 = vsel %vm1155_vm3, %v6772_v19, 0.0 }
 0x837   :  { %6667 = vmatmul.mubr.msk.f32.vlgmr.msra.gmra.mrb[74].mxu1 %vm1155_vm3, %v6774_v56  ;;  %5215 = vadd.xlane.f32.xlu0 %v5214_v57  ;;  %v5217_v25 = vsel %vm1155_vm3, %v6774_v56, 0.0 }
 0x838   :  { %5209 = vadd.xlane.f32.xlu1 %v5208_v39 }
 0x83c   :  { %5212 = vadd.xlane.f32.xlu1 %v5211_v18 }
 0x840   :  { %5218 = vadd.xlane.f32.xlu1 %v5217_v25 }
 0x84d   :  { %5859 = vperm.xlu0 %6709, %v6124_v52  }
 0x85b   :  { %v1206_v46 = vpop.xlane.xlu0 %1205  ;;  %v1209_v14 = vpop.xlane.xlu1 %1208 }
 0x85c   :  { %6775 = vrcp.f32 %v1206_v46 }
 0x85f   :  { %v2518_v3 = vpop.xlane.xlu0 %2517  ;;  %v2524_v24 = vpop.xlane.xlu1 %2523 }
 0x860   :  { %6777 = vrcp.f32 %v2518_v3 }
 0x861   :  { %6779 = vrcp.f32 %v1209_v14 }
 0x863   :  { %v2521_v31 = vpop.xlane.xlu0 %2520  ;;  %v2527_v60 = vpop.xlane.xlu1 %2526 }
 0x864   :  { %6781 = vrcp.f32 %v2521_v31 }
 0x865   :  { %6783 = vrcp.f32 %v2524_v24 }
 0x866   :  { %v6776_v9 = vpop.eup %6775 }
 0x867   :  { %v1212_v41 = vpop.xlane.xlu0 %1211  ;;  %v3865_v6 = vpop.xlane.xlu1 %3864  ;;  %v1813_v16 = vmul.f32 %v6776_v9, %v7521_v11 }
 0x868   :  { %6785 = vrcp.f32 %v1212_v41 }
 0x869   :  { %6787 = vrcp.f32 %v3865_v6 }
 0x86a   :  { %v6778_v40 = vpop.eup %6777  ;;  %6789 = vrcp.f32 %v2527_v60 }
 0x86b   :  { %v1215_v63 = vpop.xlane.xlu0 %1214  ;;  %v2530_v10 = vpop.xlane.xlu1 %2529  ;;  %v3157_v38 = vmul.f32 %v6778_v40, %v7732_v50 }
 0x86c   :  { %v6780_v20 = vpop.eup %6779  ;;  %6791 = vrcp.f32 %v1215_v63 }
 0x86d   :  { %v3172_v51 = vadd.f32 %v3157_v38, %v1813_v16  ;;  %v1815_v15 = vmul.f32 %v6780_v20, %v7523_v26 }
 0x86e   :  { %v6782_v55 = vpop.eup %6781 }
 0x86f   :  { %v3862_v0 = vpop.xlane.xlu0 %3861  ;;  %v1221_v49 = vpop.xlane.xlu1 %1220  ;;  %v3159_v35 = vmul.f32 %v6782_v55, %v7736_v58 }
 0x870   :  { %v6784_v2 = vpop.eup %6783  ;;  %6793 = vrcp.f32 %v3862_v0 }
 0x871   :  { %v3173_v17 = vadd.f32 %v3159_v35, %v1815_v15  ;;  %6795 = vrcp.f32 %v2530_v10  ;;  %v3161_v28 = vmul.f32 %v6784_v2, %v7734_v7  ;;  %v8149_v10 = vld [vmem:[#allocation17_spill] sm:$0xff]  ;;  %v8151_v35 = vld [vmem:[#allocation18_spill] sm:$0xff] }
 0x872   :  { %v6786_v1 = vpop.eup %6785 }
 0x873   :  { %v6788_v44 = vpop.eup %6787  ;;  %v1218_v22 = vpop.xlane.xlu0 %1217  ;;  %v1817_v50 = vmul.f32 %v6786_v1, %v7525_v30 }
 0x874   :  { %v3871_v11 = vpop.xlane.xlu1 %3870  ;;  %v6790_v54 = vpop.eup %6789  ;;  %6797 = vrcp.f32 %v1218_v22  ;;  %v4495_v53 = vmul.f32 %v6788_v44, %v7941_v34 }
 0x875   :  { %6799 = vrcp.f32 %v3871_v11  ;;  %v3174_v26 = vadd.f32 %v3161_v28, %v1817_v50  ;;  %v3163_v36 = vmul.f32 %v6790_v54, %v7738_v29 }
 0x876   :  { %v6792_v62 = vpop.eup %6791  ;;  %v8084_v58 = vadd.f32 %v4495_v53, %v3173_v17 }
 0x877   :  { %v3868_v12 = vpop.xlane.xlu0 %3867  ;;  %v1819_v4 = vmul.f32 %v6792_v62, %v7531_v43 }
 0x878   :  { %6801 = vrcp.f32 %v3868_v12  ;;  %v2536_v30 = vpop.xlane.xlu1 %2535 }
 0x879   :  { %v3175_v21 = vadd.f32 %v3163_v36, %v1819_v4  ;;  %6803 = vrcp.f32 %v1221_v49  ;;  %v8150_v49 = vld [vmem:[#allocation16_spill] sm:$0xff] }
 0x87a   :  { %v6794_v47 = vpop.eup %6793 }
 0x87b   :  { %v2533_v7 = vpop.xlane.xlu0 %2532  ;;  %v4493_v61 = vmul.f32 %v6794_v47, %v7937_v45  ;;  %v6796_v19 = vpop.eup %6795 }
 0x87c   :  { %6805 = vrcp.f32 %v2533_v7  ;;  %v3165_v29 = vmul.f32 %v6796_v19, %v7740_v5  ;;  %v2539_v45 = vpop.xlane.xlu1 %2538 }
 0x87d   :  { %v8089_v34 = vadd.f32 %v4493_v61, %v3172_v51  ;;  %6807 = vrcp.f32 %v2536_v30 }
 0x87e   :  { %v6798_v56 = vpop.eup %6797 }
 0x87f   :  { %v6800_v57 = vpop.eup %6799  ;;  %v1224_v39 = vpop.xlane.xlu0 %1223  ;;  %v1821_v43 = vmul.f32 %v6798_v56, %v7527_v23 }
 0x880   :  { %6809 = vrcp.f32 %v1224_v39  ;;  %v4499_v18 = vmul.f32 %v6800_v57, %v7943_v13 }
 0x881   :  { %v3176_v25 = vadd.f32 %v3165_v29, %v1821_v43 }
 0x882   :  { %v6802_v52 = vpop.eup %6801  ;;  %v8094_v46 = vadd.f32 %v4499_v18, %v3175_v21 }
 0x883   :  { %v3874_v14 = vpop.xlane.xlu0 %3873  ;;  %v4497_v3 = vmul.f32 %v6802_v52, %v7939_v8  ;;  %v6804_v24 = vpop.eup %6803 }
 0x884   :  { %6811 = vrcp.f32 %v3874_v14  ;;  %v1823_v23 = vmul.f32 %v6804_v24, %v7533_v48 }
 0x885   :  { %v4510_v31 = vadd.f32 %v4497_v3, %v3174_v26  ;;  %6813 = vrcp.f32 %v2539_v45 }
 0x886   :  { %v6806_v60 = vpop.eup %6805 }
 0x887   :  { %v1227_v41 = vpop.xlane.xlu0 %1226  ;;  %v3167_v5 = vmul.f32 %v6806_v60, %v7742_v32  ;;  %v6808_v6 = vpop.eup %6807 }
 0x888   :  { %6815 = vrcp.f32 %v1227_v41  ;;  %v3169_v16 = vmul.f32 %v6808_v6, %v8149_v10 }
 0x889   :  { %v3177_v13 = vadd.f32 %v3167_v5, %v1823_v23 }
 0x88a   :  { %v6810_v9 = vpop.eup %6809 }
 0x88b   :  { %v3877_v40 = vpop.xlane.xlu0 %3876  ;;  %v1825_v63 = vmul.f32 %v6810_v9, %v7529_v42 }
 0x88c   :  { %6817 = vrcp.f32 %v3877_v40 }
 0x88d   :  { %v3178_v8 = vadd.f32 %v3169_v16, %v1825_v63 }
 0x88e   :  { %v6812_v38 = vpop.eup %6811 }
 0x88f   :  { %v3880_v20 = vpop.xlane.xlu0 %3879  ;;  %v4501_v51 = vmul.f32 %v6812_v38, %v7945_v59  ;;  %v6814_v55 = vpop.eup %6813 }
 0x890   :  { %6819 = vrcp.f32 %v3880_v20  ;;  %v3171_v2 = vmul.f32 %v6814_v55, %v8151_v35 }
 0x891   :  { %v8102_v48 = vadd.f32 %v4501_v51, %v3176_v25 }
 0x892   :  { %v6816_v32 = vpop.eup %6815 }
 0x893   :  { %v3883_v0 = vpop.xlane.xlu0 %3882  ;;  %v1827_v15 = vmul.f32 %v6816_v32, %v8150_v49 }
 0x894   :  { %6821 = vrcp.f32 %v3883_v0 }
 0x895   :  { %v3179_v42 = vadd.f32 %v3171_v2, %v1827_v15 }
 0x896   :  { %v6818_v17 = vpop.eup %6817 }
 0x897   :  { %v4503_v1 = vmul.f32 %v6818_v17, %v7947_v27  ;;  %v5198_v26 = vpop.xlane.xlu0 %5197 }
 0x898   :  { %6823 = vrcp.f32 %v5198_v26 }
 0x899   :  { %v4513_v44 = vadd.f32 %v4503_v1, %v3177_v13 }
 0x89a   :  { %v6820_v22 = vpop.eup %6819 }
 0x89b   :  { %v4505_v11 = vmul.f32 %v6820_v22, %v7949_v37 }
 0x89d   :  { %v8108_v59 = vadd.f32 %v4505_v11, %v3178_v8 }
 0x89e   :  { %v6822_v50 = vpop.eup %6821 }
 0x89f   :  { %v4507_v28 = vmul.f32 %v6822_v50, %v7959_v33  ;;  %v5902_v50 = vlaneseq }
 0x8a1   :  { %v8111_v54 = vadd.f32 %v4507_v28, %v3179_v42  ;;  %v5905_v26 = vshrl.u32 %v5902_v50, 7 }
 0x8a2   :  { %v6824_v4 = vpop.eup %6823 }
 0x8b8   :  { %v5201_v53 = vpop.xlane.xlu1 %5200 }
 0x8bc   :  { %v5204_v62 = vpop.xlane.xlu1 %5203 }
 0x8bd   :  { %6825 = vrcp.f32 %v5204_v62 }
 0x8be   :  { %6827 = vrcp.f32 %v5201_v53  ;;  %v5903_v53 = vand.u32 127, %v5902_v50 }
 0x8c1   :  { %v5207_v57 = vpop.xlane.xlu1 %5206 }
 0x8c2   :  { %6829 = vrcp.f32 %v5207_v57 }
 0x8c4   :  { %v5216_v12 = vpop.xlane.xlu0 %5215 }
 0x8c5   :  { %v5210_v39 = vpop.xlane.xlu1 %5209 }
 0x8c6   :  { %6831 = vrcp.f32 %v5210_v39 }
 0x8c7   :  { %v6826_v30 = vpop.eup %6825 }
 0x8c8   :  { %v6828_v29 = vpop.eup %6827 }
 0x8c9   :  { %v5213_v43 = vpop.xlane.xlu1 %5212 }
 0x8ca   :  { %6833 = vrcp.f32 %v5213_v43 }
 0x8cb   :  { %6835 = vrcp.f32 %v5216_v12 }
 0x8cc   :  { %v5860_v47 = vpop.permute.xlu0 %5859  ;;  %v6830_v14 = vpop.eup %6829 }
 0x8cd   :  { %v5219_v18 = vpop.xlane.xlu1 %5218 }
 0x8ce   :  { %6837 = vrcp.f32 %v5219_v18 }
 0x8cf   :  { %v5292_v36 = vpop.f32.mrb[68].mxu0 }
 0x8d0   :  { %v5829_v27 = vmul.f32 %v6824_v4, %v5292_v36  ;;  %v6633_v21 = vpop.f32.mrb[69].mxu0  ;;  %v6832_v23 = vpop.eup %6831 }
 0x8d2   :  { %v5844_v37 = vadd.f32 %v5829_v27, %v8089_v34 }
 0x8d3   :  { %v5444_v7 = vpop.f32.mrb[70].mxu0 }
 0x8d4   :  { %v5833_v61 = vmul.f32 %v6826_v30, %v5444_v7  ;;  %v6643_v19 = vpop.f32.mrb[71].mxu0  ;;  %v5862_v33 = vadd.f32 %v5860_v47, %v5844_v37  ;;  %v6834_v6 = vpop.eup %6833 }
 0x8d6   :  { %v5846_v56 = vadd.f32 %v5833_v61, %v4510_v31  ;;  %5879 = vperm.xlu1 %6710, %v5862_v33  }
 0x8d8   :  { %v5864_v63 = vadd.f32 %v5860_v47, %v5846_v56 }
 0x8fd   :  { %v5368_v25 = vpop.f32.mrb[68].mxu1 }
 0x8fe   :  { %v5831_v52 = vmul.f32 %v6828_v29, %v5368_v25  ;;  %v6638_v45 = vpop.f32.mrb[69].mxu1 }
 0x900   :  { %v5845_v34 = vadd.f32 %v5831_v52, %v8084_v58  ;;  %v6836_v58 = vpop.eup %6835 }
 0x901   :  { %v5520_v3 = vpop.f32.mrb[70].mxu1  ;;  %v6838_v51 = vpop.eup %6837 }
 0x902   :  { %v5863_v24 = vadd.f32 %v5860_v47, %v5845_v34  ;;  %v5835_v31 = vmul.f32 %v6830_v14, %v5520_v3  ;;  %v6648_v60 = vpop.f32.mrb[71].mxu1 }
 0x904   :  { %v5847_v41 = vadd.f32 %v5835_v31, %v8094_v46  ;;  %5882 = vperm.xlu1 %6710, %v5863_v24  }
 0x905   :  { %v5596_v5 = vpop.f32.mrb[72].mxu0 }
 0x906   :  { %v5837_v13 = vmul.f32 %v6832_v23, %v5596_v5  ;;  %v5672_v9 = vpop.f32.mrb[72].mxu1  ;;  %v6653_v40 = vpop.f32.mrb[73].mxu0  ;;  %v5865_v55 = vadd.f32 %v5860_v47, %v5847_v41 }
 0x907   :  { %v5839_v10 = vmul.f32 %v6834_v6, %v5672_v9  ;;  %v6658_v16 = vpop.f32.mrb[73].mxu1 }
 0x908   :  { %v5848_v8 = vadd.f32 %v5837_v13, %v8102_v48  ;;  %5885 = vperm.xlu1 %6710, %v5864_v63  }
 0x909   :  { %v5849_v38 = vadd.f32 %v5839_v10, %v4513_v44  ;;  %v5748_v20 = vpop.f32.mrb[74].mxu0 }
 0x90a   :  { %v5841_v32 = vmul.f32 %v6836_v58, %v5748_v20  ;;  %v5824_v46 = vpop.f32.mrb[74].mxu1  ;;  %v6663_v0 = vpop.f32.mrb[75].mxu0  ;;  %v5866_v42 = vadd.f32 %v5860_v47, %v5848_v8 }
 0x90b   :  { %v5843_v49 = vmul.f32 %v6838_v51, %v5824_v46  ;;  %v6668_v15 = vpop.f32.mrb[75].mxu1  ;;  %v5867_v17 = vadd.f32 %v5860_v47, %v5849_v38 }
 0x90c   :  { %v5850_v35 = vadd.f32 %v5841_v32, %v8108_v59  ;;  %5888 = vperm.xlu1 %6710, %v5865_v55   ;;  %v5906_v59 = vsub.s32 %v5903_v53, %v5905_v26 }
 0x90d   :  { %v5851_v2 = vadd.f32 %v5843_v49, %v8111_v54 }
 0x90e   :  { %v5868_v48 = vadd.f32 %v5860_v47, %v5850_v35 }
 0x90f   :  { %v5869_v1 = vadd.f32 %v5860_v47, %v5851_v2 }
 0x910   :  { %5891 = vperm.xlu1 %6710, %v5866_v42  }
 0x914   :  { %5894 = vperm.xlu1 %6710, %v5867_v17  }
 0x918   :  { %5897 = vperm.xlu1 %6710, %v5868_v48  }
 0x91c   :  { %5900 = vperm.xlu1 %6710, %v5869_v1  }
 0x955   :  { %v5880_v44 = vpop.permute.xlu1 %5879 }
 0x956   :  { %v5907_v36 = vrot.slane %v5880_v44, %v5906_v59 }
 0x983   :  { %v5883_v22 = vpop.permute.xlu1 %5882 }
 0x984   :  { %v5911_v4 = vrot.slane %v5883_v22, %v5906_v59 }
 0x986   :  { %v5937_v37 = vsel %vm5936_vm4, %v5911_v4, %v5907_v36 }
 0x987   :  { %v5886_v11 = vpop.permute.xlu1 %5885 }
 0x988   :  { %v5915_v54 = vrot.slane %v5886_v11, %v5906_v59 }
 0x98a   :  { %v5939_v7 = vsel %vm5938_vm5, %v5915_v54, %v5937_v37 }
 0x98b   :  { %v5889_v28 = vpop.permute.xlu1 %5888 }
 0x98c   :  { %v5919_v27 = vrot.slane %v5889_v28, %v5906_v59 }
 0x98e   :  { %v5941_v19 = vsel %vm5940_vm6, %v5919_v27, %v5939_v7 }
 0x98f   :  { %v5892_v62 = vpop.permute.xlu1 %5891 }
 0x990   :  { %v5923_v21 = vrot.slane %v5892_v62, %v5906_v59 }
 0x992   :  { %v5943_v33 = vsel %vm5942_vm7, %v5923_v21, %v5941_v19 }
 0x993   :  { %v5895_v12 = vpop.permute.xlu1 %5894 }
 0x994   :  { %v5927_v30 = vrot.slane %v5895_v12, %v5906_v59 }
 0x996   :  { %v5945_v57 = vsel %vm5944_vm8, %v5927_v30, %v5943_v33 }
 0x997   :  { %v5898_v47 = vpop.permute.xlu1 %5897 }
 0x998   :  { %v5931_v61 = vrot.slane %v5898_v47, %v5906_v59 }
 0x99a   :  { %v5947_v43 = vsel %vm5946_vm9, %v5931_v61, %v5945_v57 }
 0x99b   :  { %v5901_v56 = vpop.permute.xlu1 %5900 }
 0x99c   :  { %v5935_v39 = vrot.slane %v5901_v56, %v5906_v59 }
 0x99e   :  { %v5949_v29 = vsel %vm5948_vm10, %v5935_v39, %v5947_v43 }
 0x99f   :  { %5951 = vxpose.xlu0.b32.start.end [1/1] (short) (narrow) %v5949_v29, 8 }
 0xa1f   :  { %v5967_v18 = vpop.trf.xlu0 }
 0xa20   :  { %5983 = vst.msk [vmem:[#allocation11] sm:$0xff] %vm1155_vm3, %v5967_v18 }
 0xa21   :  { %6938 = shalt.err (!%p6935_p8)
}
 0xa22   :  { %s6939_s25 = scalar_lea.hbm %s8142_s10, 128 }
 0xa23   :  { %p6940_p9 = scmp.ne.s32.totalorder %s8142_s10, %s6939_s25  ;;  %p6943_p10 = scmp.lt.u32.totalorder %s6939_s25, %s8142_s10 }
 0xa25   :  { %p6945_p11 = pnand %p6943_p10, %p6940_p9 }
 0xa27   :  { %6948 = shalt.err (!%p6945_p11)
}
 0xa28   :  { %5993 = dma.vmem_to_hbm [thread:$0]  %s5991_s21, 128, %s8142_s10, [#allocation5]  }
 0xa29   :  { %6955 = dma.done.wait [#allocation5], 128  }
 0xa2a   :  { %6956 = vsyncadd [#allocation5], 4294967168 }
 0xa2b   :  { %5997 = vsyncpa [#allocation4], 1 }
 0xa2c   :  { %5998 = vsyncpa [#allocation7], 1 }
 0xa2d   :  { %5999 = vsyncpa [#allocation10], 1 }
 0xa2e   :  { %6000 = vsyncpa [#allocation5], 1 }

</bundles_post_ra>
